<compile_context>
chip_gen: v6e
topology: v6e:2x2x1
jax: 0.10.0
libtpu: 0.0.40
codegen_flags: <defaults>
</compile_context>

<pallas_src>
import numpy as np
import jax
import jax.numpy as jnp
from jax.experimental import pallas as pl
from jax.experimental.pallas import tpu as pltpu


def _round_up(x, m):
    return (x + m - 1) // m * m


# ------------------------------ geometry ------------------------------------ #

def make_geometry(obs_shape, num_layers, num_filters, stride):
    """Canvas layout for the in-kernel conv stack.

    Activations live in VMEM as 2-D (S + PAD, channels) "canvases": rows are flattened
    spatial positions of a fixed Hc x Wc canvas (per batch element), channels in lanes.
    A 3x3 tap (i, j) is then a contiguous row-shift by i*Wc + j.  The stride-2 first
    layer is handled by polyphase-packing the obs (4*C input channels on a half-size
    canvas), which turns it into 4 row-shifted matmuls as well.
    """
    C, H, W = obs_shape
    assert stride in (1, 2), "only stride 1 or 2 supported"
    if stride == 2:
        assert H % 2 == 0 and W % 2 == 0, "even spatial dims required for stride 2"
        Hc, Wc = H // 2, W // 2
        C0 = 4 * C
    else:
        Hc, Wc = H, W
        C0 = C
    S = Hc * Wc
    PAD = _round_up(2 * Wc + 2, 8)          # >= max row shift; keeps slices in-bounds
    valid = []
    ho = (H - 3) // stride + 1
    wo = (W - 3) // stride + 1
    valid.append((ho, wo))
    for _ in range(1, num_layers):
        ho, wo = ho - 2, wo - 2
        valid.append((ho, wo))
    assert ho >= 1 and wo >= 1
    assert valid[0][0] <= Hc and valid[0][1] <= Wc
    if stride == 2:
        taps0 = [(dp * Wc + dq, dp, dq) for dp in (0, 1) for dq in (0, 1)]
    else:
        taps0 = [(i * Wc + j, i, j) for i in range(3) for j in range(3)]
    taps_rest = [(i * Wc + j, i, j) for i in range(3) for j in range(3)]
    return dict(C=C, H=H, W=W, Hc=Hc, Wc=Wc, C0=C0, S=S, PAD=PAD, stride=stride,
                num_layers=num_layers, F=num_filters, valid=valid,
                taps0=taps0, taps_rest=taps_rest)


# --------------------------- parameters (torch layout) ----------------------- #

def _orthogonal(rng, rows, cols, gain=1.0):
    a = rng.standard_normal((max(rows, cols), min(rows, cols)))
    q, r = np.linalg.qr(a)
    q = q * np.sign(np.diag(r))
    if rows < cols:
        q = q.T
    return (gain * q[:rows, :cols]).astype(np.float32)


def init_critic_params(obs_shape, action_dim, hidden_dim, feature_dim,
                       num_layers, num_filters, stride, num_critics,
                       seed=0, dense_conv=False):
    """PyTorch-layout params, initialised like `weight_init` in the reference module.

    dense_conv=True fills every conv tap with random values (used only by the numerical
    self-test so every tap/shift path is exercised; the torch init zeroes all non-center
    taps, which would hide indexing bugs)."""
    rng = np.random.default_rng(seed)
    gain_relu = float(np.sqrt(2.0))
    C, H, W = obs_shape
    convs = []
    c_in = C
    for _ in range(num_layers):
        w = np.zeros((num_filters, c_in, 3, 3), np.float32)
        w[:, :, 1, 1] = _orthogonal(rng, num_filters, c_in, gain_relu)
        if dense_conv:
            w = (rng.standard_normal(w.shape) * 0.3).astype(np.float32)
        b = np.zeros((num_filters,), np.float32)
        convs.append((w, b))
        c_in = num_filters
    ho = (H - 3) // stride + 1
    wo = (W - 3) // stride + 1
    for _ in range(1, num_layers):
        ho, wo = ho - 2, wo - 2
    flat = num_filters * ho * wo
    fc_w = _orthogonal(rng, feature_dim, flat)              # (out, in)
    fc_b = np.zeros((feature_dim,), np.float32)
    ln_g = np.ones((feature_dim,), np.float32)
    ln_b = np.zeros((feature_dim,), np.float32)

    def qhead():
        return dict(
            w1=_orthogonal(rng, hidden_dim, feature_dim + action_dim),
            b1=np.zeros((hidden_dim,), np.float32),
            w2=_orthogonal(rng, hidden_dim, hidden_dim),
            b2=np.zeros((hidden_dim,), np.float32),
            w3=_orthogonal(rng, num_critics, hidden_dim),
            b3=np.zeros((num_critics,), np.float32))

    return dict(convs=convs, fc_w=fc_w, fc_b=fc_b, ln_g=ln_g, ln_b=ln_b,
                q1=qhead(), q2=qhead(),
                meta=dict(obs_shape=obs_shape, action_dim=action_dim,
                          hidden_dim=hidden_dim, feature_dim=feature_dim,
                          num_layers=num_layers, num_filters=num_filters,
                          stride=stride, num_critics=num_critics))


# ------------------------ pack params for the fused kernel ------------------- #

def pack_critic_params(params):
    """Pack ALL weights/biases into one (R, 128) f32 buffer (single DMA, VMEM-resident)
    and bake the flatten permutation / valid-region mask into the encoder FC weight."""
    meta = params["meta"]
    geom = make_geometry(meta["obs_shape"], meta["num_layers"],
                         meta["num_filters"], meta["stride"])
    F = meta["num_filters"]; K = meta["feature_dim"]; A = meta["action_dim"]
    Hq = meta["hidden_dim"]; nc = meta["num_critics"]
    S, Wc, C0 = geom["S"], geom["Wc"], geom["C0"]
    Ho, Wo = geom["valid"][-1]

    assert 2 * Hq <= 128 and K <= 128 and F <= 128 and A <= 128 and 2 * nc <= 128, \
        "toy-size packing: widths must fit one 128-lane tile (split heads otherwise)"

    rows, offs = [], {}
    cursor = 0

    def add(name, mat):
        nonlocal cursor
        mat = np.asarray(mat, np.float32)
        r, c = mat.shape
        assert c <= 128
        buf = np.zeros((r, 128), np.float32)
        buf[:, :c] = mat
        offs[name] = cursor
        rows.append(buf)
        cursor += r

    # conv tap-weight blocks (stacked per shift, matching the kernel's tap order)
    for l, (w, b) in enumerate(params["convs"]):
        c_in = w.shape[1]
        if l == 0 and geom["stride"] == 2:
            blocks = []
            for (_, dp, dq) in geom["taps0"]:
                blk = np.zeros((C0, F), np.float32)
                for pp in (0, 1):
                    for qq in (0, 1):
                        i, j = 2 * dp + pp, 2 * dq + qq
                        if i <= 2 and j <= 2:
                            blk[(pp * 2 + qq) * c_in:(pp * 2 + qq + 1) * c_in, :] = \
                                w[:, :, i, j].T
                blocks.append(blk)
            add(f"conv{l}_w", np.concatenate(blocks, axis=0))
        else:
            taps = geom["taps0"] if l == 0 else geom["taps_rest"]
            add(f"conv{l}_w", np.concatenate([w[:, :, i, j].T for (_, i, j) in taps], 0))
        add(f"conv{l}_b", b[None, :])

    # encoder FC: rows indexed by (channel f, canvas position p); torch view(B,-1)
    # order (f, h, w) and the valid-region mask are baked in (zero rows elsewhere).
    fc_w = params["fc_w"]                                    # (K, F*Ho*Wo)
    fc_blocks = np.zeros((F * S, K), np.float32)
    for f in range(F):
        for h in range(Ho):
            for w_ in range(Wo):
                fc_blocks[f * S + h * Wc + w_, :] = fc_w[:, f * Ho * Wo + h * Wo + w_]
    add("fc_w", fc_blocks)
    add("fc_b", params["fc_b"][None, :])
    add("ln_g", params["ln_g"][None, :])
    add("ln_b", params["ln_b"][None, :])

    # both Q heads fused: concat along the hidden dim, block-diagonal layer 2,
    # layer-3 weight padded to a lane-dense 128-wide output (q1 || q2 || zeros).
    q1, q2 = params["q1"], params["q2"]
    add("q_w1f", np.concatenate([q1["w1"][:, :K].T, q2["w1"][:, :K].T], axis=1))
    add("q_w1a", np.concatenate([q1["w1"][:, K:].T, q2["w1"][:, K:].T], axis=1))
    add("q_b1", np.concatenate([q1["b1"], q2["b1"]])[None, :])
    w2 = np.zeros((2 * Hq, 2 * Hq), np.float32)
    w2[:Hq, :Hq] = q1["w2"].T
    w2[Hq:, Hq:] = q2["w2"].T
    add("q_w2", w2)
    add("q_b2", np.concatenate([q1["b2"], q2["b2"]])[None, :])
    w3 = np.zeros((2 * Hq, 128), np.float32)
    w3[:Hq, :nc] = q1["w3"].T
    w3[Hq:, nc:2 * nc] = q2["w3"].T
    add("q_w3", w3)
    b3 = np.zeros((1, 128), np.float32)
    b3[0, :nc] = q1["b3"]
    b3[0, nc:2 * nc] = q2["b3"]
    add("q_b3", b3)

    wpack = np.concatenate(rows, axis=0)
    pad_rows = _round_up(wpack.shape[0], 8) - wpack.shape[0]
    if pad_rows:
        wpack = np.concatenate([wpack, np.zeros((pad_rows, 128), np.float32)], axis=0)

    return dict(wpack=jnp.asarray(wpack), offs=offs, geom=geom, meta=meta)


# ------------------------------ fused kernel --------------------------------- #

def make_critic_forward(kp):
    geom, offs, meta = kp["geom"], kp["offs"], kp["meta"]
    S, PAD, C0, F = geom["S"], geom["PAD"], geom["C0"], geom["F"]
    L = geom["num_layers"]
    K = meta["feature_dim"]; A = meta["action_dim"]
    Hq = meta["hidden_dim"]; nc = meta["num_critics"]
    wpack = kp["wpack"]
    Rw = wpack.shape[0]
    f32 = jnp.float32

    def kernel(x0_ref, act_ref, w_ref, out_ref, *canvas):
        # ---- stage the obs into a zero-padded VMEM canvas (/255 done here) ----
        c0 = canvas[0]
        c0[0:S, :] = x0_ref[0] * (1.0 / 255.0)
        c0[S:S + PAD, :] = jnp.zeros((PAD, C0), f32)

        # ---- conv stack: each tap is a row-shifted VMEM slice -> MXU matmul ----
        y = None
        for l in range(L):
            taps = geom["taps0"] if l == 0 else geom["taps_rest"]
            c_in = C0 if l == 0 else F
            src = canvas[l]
            w_off = offs[f"conv{l}_w"]
            z = None
            for t, (d, _, _) in enumerate(taps):
                xd = src[d:d + S, :]                               # (S, c_in)
                wd = w_ref[w_off + t * c_in: w_off + (t + 1) * c_in, 0:F]
                acc = jnp.dot(xd, wd, preferred_element_type=f32)
                z = acc if z is None else z + acc
            boff = offs[f"conv{l}_b"]
            y = jnp.maximum(z + w_ref[boff:boff + 1, 0:F], 0.0)
            if l + 1 < L:
                dst = canvas[l + 1]
                dst[0:S, :] = y
                dst[S:S + PAD, :] = jnp.zeros((PAD, F), f32)

        # ---- encoder FC (flatten permutation baked into fc_w) + LN + tanh ----
        yt = y.T                                                   # (F, S)
        fc_off = offs["fc_w"]
        h = None
        for f in range(F):
            blk = w_ref[fc_off + f * S: fc_off + (f + 1) * S, 0:K]  # (S, K)
            term = jnp.dot(yt[f:f + 1, :], blk, preferred_element_type=f32)
            h = term if h is None else h + term
        h = h + w_ref[offs["fc_b"]:offs["fc_b"] + 1, 0:K]
        mean = jnp.mean(h, axis=-1, keepdims=True)
        var = jnp.mean((h - mean) ** 2, axis=-1, keepdims=True)
        hn = (h - mean) * jax.lax.rsqrt(var + 1e-5)
        g = w_ref[offs["ln_g"]:offs["ln_g"] + 1, 0:K]
        b_ = w_ref[offs["ln_b"]:offs["ln_b"] + 1, 0:K]
        feat = jnp.tanh(hn * g + b_)                               # (1, K)

        # ---- both Q heads fused; no concat (W1 split into feat/action parts) ----
        a = act_ref[0]                                             # (1, A)
        w1f = w_ref[offs["q_w1f"]:offs["q_w1f"] + K, 0:2 * Hq]
        w1a = w_ref[offs["q_w1a"]:offs["q_w1a"] + A, 0:2 * Hq]
        b1 = w_ref[offs["q_b1"]:offs["q_b1"] + 1, 0:2 * Hq]
        h1 = jnp.maximum(jnp.dot(feat, w1f, preferred_element_type=f32)
                         + jnp.dot(a, w1a, preferred_element_type=f32) + b1, 0.0)
        w2 = w_ref[offs["q_w2"]:offs["q_w2"] + 2 * Hq, 0:2 * Hq]
        b2 = w_ref[offs["q_b2"]:offs["q_b2"] + 1, 0:2 * Hq]
        h2 = jnp.maximum(jnp.dot(h1, w2, preferred_element_type=f32) + b2, 0.0)
        w3 = w_ref[offs["q_w3"]:offs["q_w3"] + 2 * Hq, 0:128]
        b3 = w_ref[offs["q_b3"]:offs["q_b3"] + 1, 0:128]
        # lane-dense (1, 128) output row: [q1 | q2 | 0...]
        out_ref[0] = jnp.dot(h2, w3, preferred_element_type=f32) + b3

    scratch = [pltpu.VMEM((S + PAD, C0), jnp.float32)]
    scratch += [pltpu.VMEM((S + PAD, F), jnp.float32)] * max(L - 1, 0)

    def pack_obs(obs):
        # Layout-only repack of the raw obs (no expansion): NCHW -> per-batch canvas
        # rows x channel lanes, with polyphase (2x2 phases folded into channels) when
        # the first conv has stride 2.  /255 happens inside the kernel.
        B = obs.shape[0]
        if geom["stride"] == 2:
            x = obs.reshape(B, geom["C"], geom["Hc"], 2, geom["Wc"], 2)
            x = jnp.transpose(x, (0, 2, 4, 3, 5, 1))               # (B,Hh,Wh,pp,qq,C)
            return x.reshape(B, S, C0).astype(jnp.float32)
        x = jnp.transpose(obs, (0, 2, 3, 1))                       # NHWC
        return x.reshape(B, S, C0).astype(jnp.float32)

    @jax.jit
    def forward(obs, action):
        B = obs.shape[0]
        x0 = pack_obs(obs)
        act = action.astype(jnp.float32).reshape(B, 1, A)
        out = pl.pallas_call(
            kernel,
            grid=(B,),                                             # batch grid; megacore
            in_specs=[
                pl.BlockSpec((1, S, C0), lambda b: (b, 0, 0)),     # per-batch obs canvas
                pl.BlockSpec((1, 1, A), lambda b: (b, 0, 0)),      # per-batch action
                pl.BlockSpec((Rw, 128), lambda b: (0, 0)),         # resident packed weights
            ],
            out_specs=pl.BlockSpec((1, 1, 128), lambda b: (b, 0, 0)),
            out_shape=jax.ShapeDtypeStruct((B, 1, 128), jnp.float32),
            scratch_shapes=scratch,
            compiler_params=pltpu.CompilerParams(
                dimension_semantics=("parallel",)),
        )(x0, act, wpack)
        q = out[:, 0, :]
        return q[:, :nc], q[:, nc:2 * nc]

    return forward


# --------------------------- pure-JAX reference ------------------------------ #

def critic_forward_reference(obs, action, params):
    meta = params["meta"]
    with jax.default_matmul_precision("highest"):
        x = obs.astype(jnp.float32) / 255.0
        for l, (w, b) in enumerate(params["convs"]):
            s = meta["stride"] if l == 0 else 1
            x = jax.lax.conv_general_dilated(
                x, jnp.asarray(w), (s, s), "VALID",
                dimension_numbers=("NCHW", "OIHW", "NCHW"),
                precision=jax.lax.Precision.HIGHEST)
            x = jnp.maximum(x + jnp.asarray(b)[None, :, None, None], 0.0)
        B = x.shape[0]
        h = x.reshape(B, -1) @ jnp.asarray(params["fc_w"]).T + jnp.asarray(params["fc_b"])
        mean = jnp.mean(h, axis=-1, keepdims=True)
        var = jnp.mean((h - mean) ** 2, axis=-1, keepdims=True)
        h = (h - mean) * jax.lax.rsqrt(var + 1e-5)
        feat = jnp.tanh(h * jnp.asarray(params["ln_g"]) + jnp.asarray(params["ln_b"]))
        xa = jnp.concatenate([feat, action.astype(jnp.float32)], axis=1)

        def qhead(qp):
            h1 = jnp.maximum(xa @ jnp.asarray(qp["w1"]).T + jnp.asarray(qp["b1"]), 0.0)
            h2 = jnp.maximum(h1 @ jnp.asarray(qp["w2"]).T + jnp.asarray(qp["b2"]), 0.0)
            return h2 @ jnp.asarray(qp["w3"]).T + jnp.asarray(qp["b3"])

        return qhead(params["q1"]), qhead(params["q2"])


# ----------------------------------- main ------------------------------------ #

if __name__ == "__main__":
    B = 2
    obs_shape = (4, 16, 16)          # (C, H, W)
    action_dim = 4
    hidden_dim = 32
    encoder_feature_dim = 32         # encoder_output_dim defaults to this
    num_layers = 2
    num_filters = 8
    stride = 2
    num_critics = 2

    key = jax.random.PRNGKey(0)
    k_obs, k_act = jax.random.split(key)
    obs = jax.random.uniform(k_obs, (B,) + obs_shape, jnp.float32, 0.0, 255.0)
    action = jax.random.uniform(k_act, (B, action_dim), jnp.float32, -1.0, 1.0)

    # 1) faithful torch `weight_init` parameters
    params = init_critic_params(obs_shape, action_dim, hidden_dim, encoder_feature_dim,
                                num_layers, num_filters, stride, num_critics, seed=0)
    fwd = make_critic_forward(pack_critic_params(params))
    q1, q2 = fwd(obs, action)
    jax.block_until_ready((q1, q2))
    assert q1.shape == (B, num_critics) and q2.shape == (B, num_critics)
    r1, r2 = critic_forward_reference(obs, action, params)
    np.testing.assert_allclose(np.asarray(q1), np.asarray(r1), rtol=2e-3, atol=1e-3)
    np.testing.assert_allclose(np.asarray(q2), np.asarray(r2), rtol=2e-3, atol=1e-3)

    # 2) dense random conv weights: exercises every tap / polyphase shift path
    params_d = init_critic_params(obs_shape, action_dim, hidden_dim, encoder_feature_dim,
                                  num_layers, num_filters, stride, num_critics,
                                  seed=1, dense_conv=True)
    fwd_d = make_critic_forward(pack_critic_params(params_d))
    qd1, qd2 = fwd_d(obs, action)
    jax.block_until_ready((qd1, qd2))
    rd1, rd2 = critic_forward_reference(obs, action, params_d)
    np.testing.assert_allclose(np.asarray(qd1), np.asarray(rd1), rtol=2e-3, atol=1e-3)
    np.testing.assert_allclose(np.asarray(qd2), np.asarray(rd2), rtol=2e-3, atol=1e-3)

    print("KERNEL_OK")
</pallas_src>

<mosaic_0001>
module attributes {stable_mosaic.version = 11 : i64} {
  func.func @kernel(%arg0: i32, %arg1: memref<1x64x16xf32, #tpu.memory_space<vmem>>, %arg2: memref<1x1x4xf32, #tpu.memory_space<vmem>>, %arg3: memref<824x128xf32, #tpu.memory_space<vmem>>, %arg4: memref<1x1x128xf32, #tpu.memory_space<vmem>>, %arg5: memref<88x16xf32, #tpu.memory_space<vmem>>, %arg6: memref<88x8xf32, #tpu.memory_space<vmem>>) attributes {dimension_semantics = [#tpu.dimension_semantics<parallel>], iteration_bounds = array<i64: 2>, scalar_prefetch = 0 : i64, scratch_operands = 2 : i64, tpu.core_type = #tpu.core_type<tc>, window_params = [{transform_indices = @transform_0, window_bounds = array<i64: 1, 64, 16>}, {transform_indices = @transform_1, window_bounds = array<i64: 1, 1, 4>}, {pipeline_mode = #tpu.pipeline_mode<synchronous>, transform_indices = @transform_2, window_bounds = array<i64: 824, 128>}, {transform_indices = @transform_3, window_bounds = array<i64: 1, 1, 128>}]} {
    %c0 = arith.constant 0 : index
    %c0_0 = arith.constant 0 : index
    %c0_1 = arith.constant 0 : index
    %0 = vector.load %arg1[%c0, %c0_0, %c0_1] : memref<1x64x16xf32, #tpu.memory_space<vmem>>, vector<1x64x16xf32>
    %1 = vector.shape_cast %0 : vector<1x64x16xf32> to vector<64x16xf32>
    %cst = arith.constant 0.00392156886 : f32
    %2 = vector.broadcast %cst : f32 to vector<64x16xf32>
    %3 = arith.mulf %1, %2 : vector<64x16xf32>
    %c0_2 = arith.constant 0 : index
    %c0_3 = arith.constant 0 : index
    %4 = vector.load %arg5[%c0_2, %c0_3] : memref<88x16xf32, #tpu.memory_space<vmem>>, vector<64x16xf32>
    tpu.vector_store %arg5[%c0_2, %c0_3], %3 {strides = array<i32>} : memref<88x16xf32, #tpu.memory_space<vmem>>, vector<64x16xf32>,
    %cst_4 = arith.constant 0.000000e+00 : f32
    %5 = vector.broadcast %cst_4 : f32 to vector<24x16xf32>
    %c64 = arith.constant 64 : index
    %c0_5 = arith.constant 0 : index
    %6 = vector.load %arg5[%c64, %c0_5] : memref<88x16xf32, #tpu.memory_space<vmem>>, vector<24x16xf32>
    tpu.vector_store %arg5[%c64, %c0_5], %5 {strides = array<i32>} : memref<88x16xf32, #tpu.memory_space<vmem>>, vector<24x16xf32>,
    %c0_6 = arith.constant 0 : index
    %c0_7 = arith.constant 0 : index
    %7 = vector.load %arg5[%c0_6, %c0_7] : memref<88x16xf32, #tpu.memory_space<vmem>>, vector<64x16xf32>
    %c0_8 = arith.constant 0 : index
    %c0_9 = arith.constant 0 : index
    %8 = vector.load %arg3[%c0_8, %c0_9] : memref<824x128xf32, #tpu.memory_space<vmem>>, vector<16x8xf32>
    %cst_10 = arith.constant dense<0.000000e+00> : vector<64x8xf32>
    %9 = tpu.matmul %7, %8, %cst_10 {dimension_numbers = #tpu.dot_dimension_numbers<[1], [0], [0], [1], [0, 0, 1, 1], [], []>} : vector<64x16xf32>, vector<16x8xf32>, vector<64x8xf32> -> vector<64x8xf32>
    %c1 = arith.constant 1 : index
    %c0_11 = arith.constant 0 : index
    %10 = vector.load %arg5[%c1, %c0_11] : memref<88x16xf32, #tpu.memory_space<vmem>>, vector<64x16xf32>
    %c16 = arith.constant 16 : index
    %c0_12 = arith.constant 0 : index
    %11 = vector.load %arg3[%c16, %c0_12] : memref<824x128xf32, #tpu.memory_space<vmem>>, vector<16x8xf32>
    %cst_13 = arith.constant dense<0.000000e+00> : vector<64x8xf32>
    %12 = tpu.matmul %10, %11, %cst_13 {dimension_numbers = #tpu.dot_dimension_numbers<[1], [0], [0], [1], [0, 0, 1, 1], [], []>} : vector<64x16xf32>, vector<16x8xf32>, vector<64x8xf32> -> vector<64x8xf32>
    %13 = arith.addf %9, %12 : vector<64x8xf32>
    %c8 = arith.constant 8 : index
    %c0_14 = arith.constant 0 : index
    %14 = vector.load %arg5[%c8, %c0_14] : memref<88x16xf32, #tpu.memory_space<vmem>>, vector<64x16xf32>
    %c32 = arith.constant 32 : index
    %c0_15 = arith.constant 0 : index
    %15 = vector.load %arg3[%c32, %c0_15] : memref<824x128xf32, #tpu.memory_space<vmem>>, vector<16x8xf32>
    %cst_16 = arith.constant dense<0.000000e+00> : vector<64x8xf32>
    %16 = tpu.matmul %14, %15, %cst_16 {dimension_numbers = #tpu.dot_dimension_numbers<[1], [0], [0], [1], [0, 0, 1, 1], [], []>} : vector<64x16xf32>, vector<16x8xf32>, vector<64x8xf32> -> vector<64x8xf32>
    %17 = arith.addf %13, %16 : vector<64x8xf32>
    %c9 = arith.constant 9 : index
    %c0_17 = arith.constant 0 : index
    %18 = vector.load %arg5[%c9, %c0_17] : memref<88x16xf32, #tpu.memory_space<vmem>>, vector<64x16xf32>
    %c48 = arith.constant 48 : index
    %c0_18 = arith.constant 0 : index
    %19 = vector.load %arg3[%c48, %c0_18] : memref<824x128xf32, #tpu.memory_space<vmem>>, vector<16x8xf32>
    %cst_19 = arith.constant dense<0.000000e+00> : vector<64x8xf32>
    %20 = tpu.matmul %18, %19, %cst_19 {dimension_numbers = #tpu.dot_dimension_numbers<[1], [0], [0], [1], [0, 0, 1, 1], [], []>} : vector<64x16xf32>, vector<16x8xf32>, vector<64x8xf32> -> vector<64x8xf32>
    %21 = arith.addf %17, %20 : vector<64x8xf32>
    %c64_20 = arith.constant 64 : index
    %c0_21 = arith.constant 0 : index
    %22 = vector.load %arg3[%c64_20, %c0_21] : memref<824x128xf32, #tpu.memory_space<vmem>>, vector<1x8xf32>
    %23 = vector.broadcast %22 : vector<1x8xf32> to vector<64x8xf32>
    %24 = arith.addf %21, %23 : vector<64x8xf32>
    %cst_22 = arith.constant 0.000000e+00 : f32
    %25 = vector.broadcast %cst_22 : f32 to vector<64x8xf32>
    %26 = arith.maximumf %24, %25 : vector<64x8xf32>
    %c0_23 = arith.constant 0 : index
    %c0_24 = arith.constant 0 : index
    %27 = vector.load %arg6[%c0_23, %c0_24] : memref<88x8xf32, #tpu.memory_space<vmem>>, vector<64x8xf32>
    tpu.vector_store %arg6[%c0_23, %c0_24], %26 {strides = array<i32>} : memref<88x8xf32, #tpu.memory_space<vmem>>, vector<64x8xf32>,
    %cst_25 = arith.constant 0.000000e+00 : f32
    %28 = vector.broadcast %cst_25 : f32 to vector<24x8xf32>
    %c64_26 = arith.constant 64 : index
    %c0_27 = arith.constant 0 : index
    %29 = vector.load %arg6[%c64_26, %c0_27] : memref<88x8xf32, #tpu.memory_space<vmem>>, vector<24x8xf32>
    tpu.vector_store %arg6[%c64_26, %c0_27], %28 {strides = array<i32>} : memref<88x8xf32, #tpu.memory_space<vmem>>, vector<24x8xf32>,
    %c0_28 = arith.constant 0 : index
    %c0_29 = arith.constant 0 : index
    %30 = vector.load %arg6[%c0_28, %c0_29] : memref<88x8xf32, #tpu.memory_space<vmem>>, vector<64x8xf32>
    %c65 = arith.constant 65 : index
    %c0_30 = arith.constant 0 : index
    %31 = vector.load %arg3[%c65, %c0_30] : memref<824x128xf32, #tpu.memory_space<vmem>>, vector<8x8xf32>
    %cst_31 = arith.constant dense<0.000000e+00> : vector<64x8xf32>
    %32 = tpu.matmul %30, %31, %cst_31 {dimension_numbers = #tpu.dot_dimension_numbers<[1], [0], [0], [1], [0, 0, 1, 1], [], []>} : vector<64x8xf32>, vector<8x8xf32>, vector<64x8xf32> -> vector<64x8xf32>
    %c1_32 = arith.constant 1 : index
    %c0_33 = arith.constant 0 : index
    %33 = vector.load %arg6[%c1_32, %c0_33] : memref<88x8xf32, #tpu.memory_space<vmem>>, vector<64x8xf32>
    %c73 = arith.constant 73 : index
    %c0_34 = arith.constant 0 : index
    %34 = vector.load %arg3[%c73, %c0_34] : memref<824x128xf32, #tpu.memory_space<vmem>>, vector<8x8xf32>
    %cst_35 = arith.constant dense<0.000000e+00> : vector<64x8xf32>
    %35 = tpu.matmul %33, %34, %cst_35 {dimension_numbers = #tpu.dot_dimension_numbers<[1], [0], [0], [1], [0, 0, 1, 1], [], []>} : vector<64x8xf32>, vector<8x8xf32>, vector<64x8xf32> -> vector<64x8xf32>
    %36 = arith.addf %32, %35 : vector<64x8xf32>
    %c2 = arith.constant 2 : index
    %c0_36 = arith.constant 0 : index
    %37 = vector.load %arg6[%c2, %c0_36] : memref<88x8xf32, #tpu.memory_space<vmem>>, vector<64x8xf32>
    %c81 = arith.constant 81 : index
    %c0_37 = arith.constant 0 : index
    %38 = vector.load %arg3[%c81, %c0_37] : memref<824x128xf32, #tpu.memory_space<vmem>>, vector<8x8xf32>
    %cst_38 = arith.constant dense<0.000000e+00> : vector<64x8xf32>
    %39 = tpu.matmul %37, %38, %cst_38 {dimension_numbers = #tpu.dot_dimension_numbers<[1], [0], [0], [1], [0, 0, 1, 1], [], []>} : vector<64x8xf32>, vector<8x8xf32>, vector<64x8xf32> -> vector<64x8xf32>
    %40 = arith.addf %36, %39 : vector<64x8xf32>
    %c8_39 = arith.constant 8 : index
    %c0_40 = arith.constant 0 : index
    %41 = vector.load %arg6[%c8_39, %c0_40] : memref<88x8xf32, #tpu.memory_space<vmem>>, vector<64x8xf32>
    %c89 = arith.constant 89 : index
    %c0_41 = arith.constant 0 : index
    %42 = vector.load %arg3[%c89, %c0_41] : memref<824x128xf32, #tpu.memory_space<vmem>>, vector<8x8xf32>
    %cst_42 = arith.constant dense<0.000000e+00> : vector<64x8xf32>
    %43 = tpu.matmul %41, %42, %cst_42 {dimension_numbers = #tpu.dot_dimension_numbers<[1], [0], [0], [1], [0, 0, 1, 1], [], []>} : vector<64x8xf32>, vector<8x8xf32>, vector<64x8xf32> -> vector<64x8xf32>
    %44 = arith.addf %40, %43 : vector<64x8xf32>
    %c9_43 = arith.constant 9 : index
    %c0_44 = arith.constant 0 : index
    %45 = vector.load %arg6[%c9_43, %c0_44] : memref<88x8xf32, #tpu.memory_space<vmem>>, vector<64x8xf32>
    %c97 = arith.constant 97 : index
    %c0_45 = arith.constant 0 : index
    %46 = vector.load %arg3[%c97, %c0_45] : memref<824x128xf32, #tpu.memory_space<vmem>>, vector<8x8xf32>
    %cst_46 = arith.constant dense<0.000000e+00> : vector<64x8xf32>
    %47 = tpu.matmul %45, %46, %cst_46 {dimension_numbers = #tpu.dot_dimension_numbers<[1], [0], [0], [1], [0, 0, 1, 1], [], []>} : vector<64x8xf32>, vector<8x8xf32>, vector<64x8xf32> -> vector<64x8xf32>
    %48 = arith.addf %44, %47 : vector<64x8xf32>
    %c10 = arith.constant 10 : index
    %c0_47 = arith.constant 0 : index
    %49 = vector.load %arg6[%c10, %c0_47] : memref<88x8xf32, #tpu.memory_space<vmem>>, vector<64x8xf32>
    %c105 = arith.constant 105 : index
    %c0_48 = arith.constant 0 : index
    %50 = vector.load %arg3[%c105, %c0_48] : memref<824x128xf32, #tpu.memory_space<vmem>>, vector<8x8xf32>
    %cst_49 = arith.constant dense<0.000000e+00> : vector<64x8xf32>
    %51 = tpu.matmul %49, %50, %cst_49 {dimension_numbers = #tpu.dot_dimension_numbers<[1], [0], [0], [1], [0, 0, 1, 1], [], []>} : vector<64x8xf32>, vector<8x8xf32>, vector<64x8xf32> -> vector<64x8xf32>
    %52 = arith.addf %48, %51 : vector<64x8xf32>
    %c16_50 = arith.constant 16 : index
    %c0_51 = arith.constant 0 : index
    %53 = vector.load %arg6[%c16_50, %c0_51] : memref<88x8xf32, #tpu.memory_space<vmem>>, vector<64x8xf32>
    %c113 = arith.constant 113 : index
    %c0_52 = arith.constant 0 : index
    %54 = vector.load %arg3[%c113, %c0_52] : memref<824x128xf32, #tpu.memory_space<vmem>>, vector<8x8xf32>
    %cst_53 = arith.constant dense<0.000000e+00> : vector<64x8xf32>
    %55 = tpu.matmul %53, %54, %cst_53 {dimension_numbers = #tpu.dot_dimension_numbers<[1], [0], [0], [1], [0, 0, 1, 1], [], []>} : vector<64x8xf32>, vector<8x8xf32>, vector<64x8xf32> -> vector<64x8xf32>
    %56 = arith.addf %52, %55 : vector<64x8xf32>
    %c17 = arith.constant 17 : index
    %c0_54 = arith.constant 0 : index
    %57 = vector.load %arg6[%c17, %c0_54] : memref<88x8xf32, #tpu.memory_space<vmem>>, vector<64x8xf32>
    %c121 = arith.constant 121 : index
    %c0_55 = arith.constant 0 : index
    %58 = vector.load %arg3[%c121, %c0_55] : memref<824x128xf32, #tpu.memory_space<vmem>>, vector<8x8xf32>
    %cst_56 = arith.constant dense<0.000000e+00> : vector<64x8xf32>
    %59 = tpu.matmul %57, %58, %cst_56 {dimension_numbers = #tpu.dot_dimension_numbers<[1], [0], [0], [1], [0, 0, 1, 1], [], []>} : vector<64x8xf32>, vector<8x8xf32>, vector<64x8xf32> -> vector<64x8xf32>
    %60 = arith.addf %56, %59 : vector<64x8xf32>
    %c18 = arith.constant 18 : index
    %c0_57 = arith.constant 0 : index
    %61 = vector.load %arg6[%c18, %c0_57] : memref<88x8xf32, #tpu.memory_space<vmem>>, vector<64x8xf32>
    %c129 = arith.constant 129 : index
    %c0_58 = arith.constant 0 : index
    %62 = vector.load %arg3[%c129, %c0_58] : memref<824x128xf32, #tpu.memory_space<vmem>>, vector<8x8xf32>
    %cst_59 = arith.constant dense<0.000000e+00> : vector<64x8xf32>
    %63 = tpu.matmul %61, %62, %cst_59 {dimension_numbers = #tpu.dot_dimension_numbers<[1], [0], [0], [1], [0, 0, 1, 1], [], []>} : vector<64x8xf32>, vector<8x8xf32>, vector<64x8xf32> -> vector<64x8xf32>
    %64 = arith.addf %60, %63 : vector<64x8xf32>
    %c137 = arith.constant 137 : index
    %c0_60 = arith.constant 0 : index
    %65 = vector.load %arg3[%c137, %c0_60] : memref<824x128xf32, #tpu.memory_space<vmem>>, vector<1x8xf32>
    %66 = vector.broadcast %65 : vector<1x8xf32> to vector<64x8xf32>
    %67 = arith.addf %64, %66 : vector<64x8xf32>
    %cst_61 = arith.constant 0.000000e+00 : f32
    %68 = vector.broadcast %cst_61 : f32 to vector<64x8xf32>
    %69 = arith.maximumf %67, %68 : vector<64x8xf32>
    %70 = tpu.transpose %69, [1, 0] : vector<64x8xf32> -> vector<8x64xf32>
    %c138 = arith.constant 138 : index
    %c0_62 = arith.constant 0 : index
    %71 = vector.load %arg3[%c138, %c0_62] : memref<824x128xf32, #tpu.memory_space<vmem>>, vector<64x32xf32>
    %72 = vector.extract_strided_slice %70 {offsets = [0, 0], sizes = [1, 64], strides = [1, 1]} : vector<8x64xf32> to vector<1x64xf32>
    %cst_63 = arith.constant dense<0.000000e+00> : vector<1x32xf32>
    %73 = tpu.matmul %72, %71, %cst_63 {dimension_numbers = #tpu.dot_dimension_numbers<[1], [0], [0], [1], [0, 0, 1, 1], [], []>} : vector<1x64xf32>, vector<64x32xf32>, vector<1x32xf32> -> vector<1x32xf32>
    %c202 = arith.constant 202 : index
    %c0_64 = arith.constant 0 : index
    %74 = vector.load %arg3[%c202, %c0_64] : memref<824x128xf32, #tpu.memory_space<vmem>>, vector<64x32xf32>
    %75 = vector.extract_strided_slice %70 {offsets = [1, 0], sizes = [1, 64], strides = [1, 1]} : vector<8x64xf32> to vector<1x64xf32>
    %cst_65 = arith.constant dense<0.000000e+00> : vector<1x32xf32>
    %76 = tpu.matmul %75, %74, %cst_65 {dimension_numbers = #tpu.dot_dimension_numbers<[1], [0], [0], [1], [0, 0, 1, 1], [], []>} : vector<1x64xf32>, vector<64x32xf32>, vector<1x32xf32> -> vector<1x32xf32>
    %77 = arith.addf %73, %76 : vector<1x32xf32>
    %c266 = arith.constant 266 : index
    %c0_66 = arith.constant 0 : index
    %78 = vector.load %arg3[%c266, %c0_66] : memref<824x128xf32, #tpu.memory_space<vmem>>, vector<64x32xf32>
    %79 = vector.extract_strided_slice %70 {offsets = [2, 0], sizes = [1, 64], strides = [1, 1]} : vector<8x64xf32> to vector<1x64xf32>
    %cst_67 = arith.constant dense<0.000000e+00> : vector<1x32xf32>
    %80 = tpu.matmul %79, %78, %cst_67 {dimension_numbers = #tpu.dot_dimension_numbers<[1], [0], [0], [1], [0, 0, 1, 1], [], []>} : vector<1x64xf32>, vector<64x32xf32>, vector<1x32xf32> -> vector<1x32xf32>
    %81 = arith.addf %77, %80 : vector<1x32xf32>
    %c330 = arith.constant 330 : index
    %c0_68 = arith.constant 0 : index
    %82 = vector.load %arg3[%c330, %c0_68] : memref<824x128xf32, #tpu.memory_space<vmem>>, vector<64x32xf32>
    %83 = vector.extract_strided_slice %70 {offsets = [3, 0], sizes = [1, 64], strides = [1, 1]} : vector<8x64xf32> to vector<1x64xf32>
    %cst_69 = arith.constant dense<0.000000e+00> : vector<1x32xf32>
    %84 = tpu.matmul %83, %82, %cst_69 {dimension_numbers = #tpu.dot_dimension_numbers<[1], [0], [0], [1], [0, 0, 1, 1], [], []>} : vector<1x64xf32>, vector<64x32xf32>, vector<1x32xf32> -> vector<1x32xf32>
    %85 = arith.addf %81, %84 : vector<1x32xf32>
    %c394 = arith.constant 394 : index
    %c0_70 = arith.constant 0 : index
    %86 = vector.load %arg3[%c394, %c0_70] : memref<824x128xf32, #tpu.memory_space<vmem>>, vector<64x32xf32>
    %87 = vector.extract_strided_slice %70 {offsets = [4, 0], sizes = [1, 64], strides = [1, 1]} : vector<8x64xf32> to vector<1x64xf32>
    %cst_71 = arith.constant dense<0.000000e+00> : vector<1x32xf32>
    %88 = tpu.matmul %87, %86, %cst_71 {dimension_numbers = #tpu.dot_dimension_numbers<[1], [0], [0], [1], [0, 0, 1, 1], [], []>} : vector<1x64xf32>, vector<64x32xf32>, vector<1x32xf32> -> vector<1x32xf32>
    %89 = arith.addf %85, %88 : vector<1x32xf32>
    %c458 = arith.constant 458 : index
    %c0_72 = arith.constant 0 : index
    %90 = vector.load %arg3[%c458, %c0_72] : memref<824x128xf32, #tpu.memory_space<vmem>>, vector<64x32xf32>
    %91 = vector.extract_strided_slice %70 {offsets = [5, 0], sizes = [1, 64], strides = [1, 1]} : vector<8x64xf32> to vector<1x64xf32>
    %cst_73 = arith.constant dense<0.000000e+00> : vector<1x32xf32>
    %92 = tpu.matmul %91, %90, %cst_73 {dimension_numbers = #tpu.dot_dimension_numbers<[1], [0], [0], [1], [0, 0, 1, 1], [], []>} : vector<1x64xf32>, vector<64x32xf32>, vector<1x32xf32> -> vector<1x32xf32>
    %93 = arith.addf %89, %92 : vector<1x32xf32>
    %c522 = arith.constant 522 : index
    %c0_74 = arith.constant 0 : index
    %94 = vector.load %arg3[%c522, %c0_74] : memref<824x128xf32, #tpu.memory_space<vmem>>, vector<64x32xf32>
    %95 = vector.extract_strided_slice %70 {offsets = [6, 0], sizes = [1, 64], strides = [1, 1]} : vector<8x64xf32> to vector<1x64xf32>
    %cst_75 = arith.constant dense<0.000000e+00> : vector<1x32xf32>
    %96 = tpu.matmul %95, %94, %cst_75 {dimension_numbers = #tpu.dot_dimension_numbers<[1], [0], [0], [1], [0, 0, 1, 1], [], []>} : vector<1x64xf32>, vector<64x32xf32>, vector<1x32xf32> -> vector<1x32xf32>
    %97 = arith.addf %93, %96 : vector<1x32xf32>
    %c586 = arith.constant 586 : index
    %c0_76 = arith.constant 0 : index
    %98 = vector.load %arg3[%c586, %c0_76] : memref<824x128xf32, #tpu.memory_space<vmem>>, vector<64x32xf32>
    %99 = vector.extract_strided_slice %70 {offsets = [7, 0], sizes = [1, 64], strides = [1, 1]} : vector<8x64xf32> to vector<1x64xf32>
    %cst_77 = arith.constant dense<0.000000e+00> : vector<1x32xf32>
    %100 = tpu.matmul %99, %98, %cst_77 {dimension_numbers = #tpu.dot_dimension_numbers<[1], [0], [0], [1], [0, 0, 1, 1], [], []>} : vector<1x64xf32>, vector<64x32xf32>, vector<1x32xf32> -> vector<1x32xf32>
    %101 = arith.addf %97, %100 : vector<1x32xf32>
    %c650 = arith.constant 650 : index
    %c0_78 = arith.constant 0 : index
    %102 = vector.load %arg3[%c650, %c0_78] : memref<824x128xf32, #tpu.memory_space<vmem>>, vector<1x32xf32>
    %103 = arith.addf %101, %102 : vector<1x32xf32>
    %cst_79 = arith.constant dense<0.000000e+00> : vector<1xf32>
    %104 = vector.multi_reduction <add>, %103, %cst_79 [1] : vector<1x32xf32> to vector<1xf32>
    %105 = vector.shape_cast %104 : vector<1xf32> to vector<1x1xf32>
    %cst_80 = arith.constant 3.200000e+01 : f32
    %106 = vector.broadcast %cst_80 : f32 to vector<1x1xf32>
    %107 = arith.divf %105, %106 : vector<1x1xf32>
    %108 = vector.broadcast %107 : vector<1x1xf32> to vector<1x32xf32>
    %109 = arith.subf %103, %108 : vector<1x32xf32>
    %110 = arith.mulf %109, %109 : vector<1x32xf32>
    %cst_81 = arith.constant dense<0.000000e+00> : vector<1xf32>
    %111 = vector.multi_reduction <add>, %110, %cst_81 [1] : vector<1x32xf32> to vector<1xf32>
    %112 = vector.shape_cast %111 : vector<1xf32> to vector<1x1xf32>
    %cst_82 = arith.constant 3.200000e+01 : f32
    %113 = vector.broadcast %cst_82 : f32 to vector<1x1xf32>
    %114 = arith.divf %112, %113 : vector<1x1xf32>
    %115 = vector.broadcast %107 : vector<1x1xf32> to vector<1x32xf32>
    %116 = arith.subf %103, %115 : vector<1x32xf32>
    %cst_83 = arith.constant 9.99999974E-6 : f32
    %117 = vector.broadcast %cst_83 : f32 to vector<1x1xf32>
    %118 = arith.addf %114, %117 : vector<1x1xf32>
    %119 = math.rsqrt %118 : vector<1x1xf32>
    %120 = vector.broadcast %119 : vector<1x1xf32> to vector<1x32xf32>
    %121 = arith.mulf %116, %120 : vector<1x32xf32>
    %c651 = arith.constant 651 : index
    %c0_84 = arith.constant 0 : index
    %122 = vector.load %arg3[%c651, %c0_84] : memref<824x128xf32, #tpu.memory_space<vmem>>, vector<1x32xf32>
    %c652 = arith.constant 652 : index
    %c0_85 = arith.constant 0 : index
    %123 = vector.load %arg3[%c652, %c0_85] : memref<824x128xf32, #tpu.memory_space<vmem>>, vector<1x32xf32>
    %124 = arith.mulf %121, %122 : vector<1x32xf32>
    %125 = arith.addf %124, %123 : vector<1x32xf32>
    %126 = math.tanh %125 : vector<1x32xf32>
    %c0_86 = arith.constant 0 : index
    %c0_87 = arith.constant 0 : index
    %c0_88 = arith.constant 0 : index
    %127 = vector.load %arg2[%c0_86, %c0_87, %c0_88] : memref<1x1x4xf32, #tpu.memory_space<vmem>>, vector<1x1x4xf32>
    %128 = vector.shape_cast %127 : vector<1x1x4xf32> to vector<1x4xf32>
    %c653 = arith.constant 653 : index
    %c0_89 = arith.constant 0 : index
    %129 = vector.load %arg3[%c653, %c0_89] : memref<824x128xf32, #tpu.memory_space<vmem>>, vector<32x64xf32>
    %c685 = arith.constant 685 : index
    %c0_90 = arith.constant 0 : index
    %130 = vector.load %arg3[%c685, %c0_90] : memref<824x128xf32, #tpu.memory_space<vmem>>, vector<4x64xf32>
    %c689 = arith.constant 689 : index
    %c0_91 = arith.constant 0 : index
    %131 = vector.load %arg3[%c689, %c0_91] : memref<824x128xf32, #tpu.memory_space<vmem>>, vector<1x64xf32>
    %cst_92 = arith.constant dense<0.000000e+00> : vector<1x64xf32>
    %132 = tpu.matmul %126, %129, %cst_92 {dimension_numbers = #tpu.dot_dimension_numbers<[1], [0], [0], [1], [0, 0, 1, 1], [], []>} : vector<1x32xf32>, vector<32x64xf32>, vector<1x64xf32> -> vector<1x64xf32>
    %cst_93 = arith.constant dense<0.000000e+00> : vector<1x64xf32>
    %133 = tpu.matmul %128, %130, %cst_93 {dimension_numbers = #tpu.dot_dimension_numbers<[1], [0], [0], [1], [0, 0, 1, 1], [], []>} : vector<1x4xf32>, vector<4x64xf32>, vector<1x64xf32> -> vector<1x64xf32>
    %134 = arith.addf %132, %133 : vector<1x64xf32>
    %135 = arith.addf %134, %131 : vector<1x64xf32>
    %cst_94 = arith.constant 0.000000e+00 : f32
    %136 = vector.broadcast %cst_94 : f32 to vector<1x64xf32>
    %137 = arith.maximumf %135, %136 : vector<1x64xf32>
    %c690 = arith.constant 690 : index
    %c0_95 = arith.constant 0 : index
    %138 = vector.load %arg3[%c690, %c0_95] : memref<824x128xf32, #tpu.memory_space<vmem>>, vector<64x64xf32>
    %c754 = arith.constant 754 : index
    %c0_96 = arith.constant 0 : index
    %139 = vector.load %arg3[%c754, %c0_96] : memref<824x128xf32, #tpu.memory_space<vmem>>, vector<1x64xf32>
    %cst_97 = arith.constant dense<0.000000e+00> : vector<1x64xf32>
    %140 = tpu.matmul %137, %138, %cst_97 {dimension_numbers = #tpu.dot_dimension_numbers<[1], [0], [0], [1], [0, 0, 1, 1], [], []>} : vector<1x64xf32>, vector<64x64xf32>, vector<1x64xf32> -> vector<1x64xf32>
    %141 = arith.addf %140, %139 : vector<1x64xf32>
    %cst_98 = arith.constant 0.000000e+00 : f32
    %142 = vector.broadcast %cst_98 : f32 to vector<1x64xf32>
    %143 = arith.maximumf %141, %142 : vector<1x64xf32>
    %c755 = arith.constant 755 : index
    %c0_99 = arith.constant 0 : index
    %144 = vector.load %arg3[%c755, %c0_99] : memref<824x128xf32, #tpu.memory_space<vmem>>, vector<64x128xf32>
    %c819 = arith.constant 819 : index
    %c0_100 = arith.constant 0 : index
    %145 = vector.load %arg3[%c819, %c0_100] : memref<824x128xf32, #tpu.memory_space<vmem>>, vector<1x128xf32>
    %cst_101 = arith.constant dense<0.000000e+00> : vector<1x128xf32>
    %146 = tpu.matmul %143, %144, %cst_101 {dimension_numbers = #tpu.dot_dimension_numbers<[1], [0], [0], [1], [0, 0, 1, 1], [], []>} : vector<1x64xf32>, vector<64x128xf32>, vector<1x128xf32> -> vector<1x128xf32>
    %147 = arith.addf %146, %145 : vector<1x128xf32>
    %c0_102 = arith.constant 0 : index
    %c0_103 = arith.constant 0 : index
    %c0_104 = arith.constant 0 : index
    %148 = vector.load %arg4[%c0_102, %c0_103, %c0_104] : memref<1x1x128xf32, #tpu.memory_space<vmem>>, vector<1x1x128xf32>
    %149 = vector.shape_cast %148 : vector<1x1x128xf32> to vector<1x128xf32>
    %150 = vector.shape_cast %147 : vector<1x128xf32> to vector<1x1x128xf32>
    tpu.vector_store %arg4[%c0_102, %c0_103, %c0_104], %150 {strides = array<i32>} : memref<1x1x128xf32, #tpu.memory_space<vmem>>, vector<1x1x128xf32>,
    return
  }
  func.func @transform_0(%arg0: i32) -> (i32, i32, i32) {
    %c0_i32 = arith.constant 0 : i32
    %c0_i32_0 = arith.constant 0 : i32
    %c0_i32_1 = arith.constant 0 : i32
    return %arg0, %c0_i32, %c0_i32_0 : i32, i32, i32
  }
  func.func @transform_1(%arg0: i32) -> (i32, i32, i32) {
    %c0_i32 = arith.constant 0 : i32
    %c0_i32_0 = arith.constant 0 : i32
    %c0_i32_1 = arith.constant 0 : i32
    return %arg0, %c0_i32, %c0_i32_0 : i32, i32, i32
  }
  func.func @transform_2(%arg0: i32) -> (i32, i32) {
    %c0_i32 = arith.constant 0 : i32
    %c0_i32_0 = arith.constant 0 : i32
    %c0_i32_1 = arith.constant 0 : i32
    return %c0_i32, %c0_i32_0 : i32, i32
  }
  func.func @transform_3(%arg0: i32) -> (i32, i32, i32) {
    %c0_i32 = arith.constant 0 : i32
    %c0_i32_0 = arith.constant 0 : i32
    %c0_i32_1 = arith.constant 0 : i32
    return %arg0, %c0_i32, %c0_i32_0 : i32, i32, i32
  }
}

</mosaic_0001>

<bundles_post_ra>
// kernel: forward.1
= control target key start
LH: loop header
LB: loop body
LE: loop exit
PB: predicated region body
PF: predicated region fallthrough
CT: control target
= control target key end

     0   :  { %s4012_s12 = smov 0   ;;  %s4759_s0 = inlined_call_operand.vmem [shape: f32[2,64,16], index: 0, kind: input, shape index: {}]   ;;  %s4760_s1 = inlined_call_operand.vmem [shape: f32[2,1,4], index: 1, kind: input, shape index: {}]   ;;  %s4761_s2 = inlined_call_operand.vmem [shape: f32[824,128], index: 2, kind: input, shape index: {}]   ;;  %s4762_s3 = inlined_call_operand.vmem [shape: f32[2,1,128], index: 3, kind: output, shape index: {}]  }
   0x1 LB: > { %s3225_s13 = sadd.s32 4294967295, %s3988_s12   ;;  %p3229_p0 = scmp.ge.s32.totalorder %s3988_s12, 1  ;;  %s3988_s12 = sphi %s4012_s12, %s13_s12  }
   0x2   : > { %p145_p1 = scmp.lt.s32.totalorder %s3988_s12, 3 }
   0x4   : > { %p146_p2 = pnand %p3229_p0, %p145_p1 }
   0x5   : > { %p170_p3 = scmp.lt.s32.totalorder (!%p146_p2), %s3225_s13, 1 }
   0x6   : > { %149 = sbr.rel (%p146_p2) target bundleno = 1814 (0x716), region = 32 }
   0xb   : > { %v228_v0 = vld [vmem:[%s4761_s2 + $0x18] sm:$0xff]  ;;  %v218_v1 = vld [vmem:[%s4761_s2 + $0x8] sm:$0xff]  ;;  %v227_v2 = vld [vmem:[%s4761_s2 + $0x10] sm:$0xff]  ;;  %vm197_vm0 = vcmask 130048   ;;  %v4763_v4 = vmov 0.0   ;;  %s4767_s13 = smov (!%p170_p3, %s3225_s13), 1 }
   0xc   : > { %3572 = vmatprep.subr.mxu0 %v228_v0  ;;  %3588 = vmatprep.subr.mxu1 %v218_v1  ;;  %v217_v3 = vld [vmem:[%s4761_s2] sm:$0xff]  ;;  %206 = vst.msk [vmem:[#allocation2 + $0x40] sm:$0xff] %vm197_vm0, %v4763_v4  ;;  %207 = vst.msk [vmem:[#allocation2 + $0x48] sm:$0xff] %vm197_vm0, %v4763_v4  ;;  %v496_v5 = vld [vmem:[%s4761_s2 + $0x28] sm:$0xff]  ;;  %s3353_s26 = sshll.u32 %s4767_s13, 6  ;;  %vm802_vm1 = vcmask 64512   ;;  %s177_s15 = scalar_lea.vmem %s4760_s1, %s4767_s13 }
   0xd   : > { %3573 = vmatpush3.msra.mxu0 %v228_v0  ;;  %3589 = vmatpush3.msra.mxu1 %v218_v1  ;;  %v643_v6 = vld [vmem:[%s4761_s2 + $0x38] sm:$0xff]  ;;  %s174_s29 = scalar_lea.vmem %s4759_s0, %s3353_s26  ;;  %v495_v29 = vld [vmem:[%s4761_s2 + $0x20] sm:$0xff]  ;;  %v642_v30 = vld [vmem:[%s4761_s2 + $0x30] sm:$0xff]  ;;  %811 = vst.msk [vmem:[#allocation3 + $0x40] sm:$0xff] %vm802_vm1, %v4763_v4  ;;  %vm3991_vm2 = vmmov 0   ;;  %vm2183_vm3 = vcmask 523264   ;;  %s180_s18 = scalar_lea.vmem %s4762_s3, %s4767_s13 }
   0xe   : > { %3574 = vmatprep.subr.mxu0 %v227_v2  ;;  %3590 = vmatprep.subr.mxu1 %v217_v3  ;;  %v181_v7 = vld [vmem:[%s174_s29] sm:$0xff]  ;;  %v182_v8 = vld [vmem:[%s174_s29 + $0x8] sm:$0xff]  ;;  %v183_v9 = vld [vmem:[%s174_s29 + $0x10] sm:$0xff]  ;;  %812 = vst.msk [vmem:[#allocation3 + $0x48] sm:$0xff] %vm802_vm1, %v4763_v4  ;;  %vm2822_vm4 = vcmask 253952   ;;  %vm2853_vm5 = vcmask 1043456  }
   0xf   : > { %3575 = vmatpush3.msra.mxu0 %v227_v2  ;;  %3591 = vmatpush3.msra.mxu1 %v217_v3  ;;  %v189_v10 = vmul.f32 0.003921569, %v181_v7  ;;  %v190_v11 = vmul.f32 0.003921569, %v182_v8  ;;  %v191_v12 = vmul.f32 0.003921569, %v183_v9 }
  0x10   : > { %3604 = vmatprep.subr.mxu0 %v496_v5  ;;  %3620 = vmatprep.subr.mxu1 %v643_v6  ;;  %v184_v13 = vld [vmem:[%s174_s29 + $0x18] sm:$0xff]  ;;  %v185_v14 = vld [vmem:[%s174_s29 + $0x20] sm:$0xff]  ;;  %v186_v15 = vld [vmem:[%s174_s29 + $0x28] sm:$0xff]  ;;  %813 = vst.msk [vmem:[#allocation3 + $0x50] sm:$0xff] %vm802_vm1, %v4763_v4  ;;  %vm2849_vm6 = vcmask 31744   ;;  %vm2927_vm7 = vcmask 261120  }
  0x11   : > { %198 = vst.msk [vmem:[#allocation2] sm:$0xff] %vm197_vm0, %v189_v10  ;;  %199 = vst.msk [vmem:[#allocation2 + $0x8] sm:$0xff] %vm197_vm0, %v190_v11  ;;  %v192_v16 = vmul.f32 0.003921569, %v184_v13  ;;  %v193_v17 = vmul.f32 0.003921569, %v185_v14 }
  0x12   : > { %200 = vst.msk [vmem:[#allocation2 + $0x10] sm:$0xff] %vm197_vm0, %v191_v12  ;;  %v194_v18 = vmul.f32 0.003921569, %v186_v15  ;;  %v187_v19 = vld [vmem:[%s174_s29 + $0x30] sm:$0xff]  ;;  %v188_v20 = vld [vmem:[%s174_s29 + $0x38] sm:$0xff]  ;;  %v822_v44 = vld [vmem:[%s4761_s2 + $0x41] sm:$0xff] }
  0x13   : > { %201 = vst.msk [vmem:[#allocation2 + $0x18] sm:$0xff] %vm197_vm0, %v192_v16  ;;  %202 = vst.msk [vmem:[#allocation2 + $0x20] sm:$0xff] %vm197_vm0, %v193_v17  ;;  %v195_v21 = vmul.f32 0.003921569, %v187_v19  ;;  %v196_v22 = vmul.f32 0.003921569, %v188_v20 }
  0x14   : > { %203 = vst.msk [vmem:[#allocation2 + $0x28] sm:$0xff] %vm197_vm0, %v194_v18  ;;  %v494_v41 = vld [vmem:[#allocation2 + $0x40] sm:$0xff]  ;;  %v831_v43 = vld [vmem:[%s4761_s2 + $0x49] sm:$0xff]  ;;  %v4109_v45 = vld [vmem:[%s4761_s2 + $0x51] sm:$0xff] }
  0x15   : > { %204 = vst.msk [vmem:[#allocation2 + $0x30] sm:$0xff] %vm197_vm0, %v195_v21  ;;  %205 = vst.msk [vmem:[#allocation2 + $0x38] sm:$0xff] %vm197_vm0, %v196_v22  ;;  %v641_v42 = vld [vmem:[#allocation2 + $0x41] sm:$0xff]  ;;  %v4115_v46 = vld [vmem:[%s4761_s2 + $0x59] sm:$0xff] }
  0x18   : > { %v219_v23 = vld [vmem:[#allocation2 + $0x1] sm:$0xff] }
  0x19   : > { %v209_v24 = vld [vmem:[#allocation2] sm:$0xff]  ;;  %v220_v25 = vld [vmem:[#allocation2 + $0x9] sm:$0xff]  ;;  %3576 = vmatprep.mubr.msk.f32.mxu0 %vm197_vm0, %v219_v23 }
  0x1a   : > { %3592 = vmatprep.mubr.msk.f32.mxu1 %vm197_vm0, %v209_v24  ;;  %v210_v26 = vld [vmem:[#allocation2 + $0x8] sm:$0xff]  ;;  %v211_v27 = vld [vmem:[#allocation2 + $0x10] sm:$0xff]  ;;  %3577 = vmatmul.mubr.msk.f32.vlgmr.msra.gmra.mxu0 %vm197_vm0, %v220_v25  ;;  %v222_v31 = vld [vmem:[#allocation2 + $0x19] sm:$0xff] }
  0x1b   : > { %3593 = vmatmul.mubr.msk.f32.vlgmr.msra.gmra.mxu1 %vm197_vm0, %v210_v26  ;;  %v221_v28 = vld [vmem:[#allocation2 + $0x11] sm:$0xff]  ;;  %3605 = vmatpush3.msra.mxu0 %v496_v5  ;;  %v223_v33 = vld [vmem:[#allocation2 + $0x21] sm:$0xff]  ;;  %v3264_v5 = vld [vmem:[%s4761_s2 + $0x40] ss:$0 sm:$0xff] }
  0x1c   : > { %3621 = vmatpush3.msra.mxu1 %v643_v6  ;;  %v212_v32 = vld [vmem:[#allocation2 + $0x18] sm:$0xff]  ;;  %3579 = vmatprep.mubr.msk.f32.mxu0 %vm197_vm0, %v221_v28  ;;  %v213_v34 = vld [vmem:[#allocation2 + $0x20] sm:$0xff]  ;;  %v224_v35 = vld [vmem:[#allocation2 + $0x29] sm:$0xff] }
  0x1d   : > { %3595 = vmatprep.mubr.msk.f32.mxu1 %vm197_vm0, %v211_v27  ;;  %3606 = vmatprep.subr.mxu0 %v495_v29  ;;  %v214_v36 = vld [vmem:[#allocation2 + $0x28] sm:$0xff]  ;;  %v225_v37 = vld [vmem:[#allocation2 + $0x31] sm:$0xff]  ;;  %v226_v39 = vld [vmem:[#allocation2 + $0x39] sm:$0xff] }
  0x1e   : > { %3622 = vmatprep.subr.mxu1 %v642_v30  ;;  %3580 = vmatmul.mubr.msk.f32.gmra.mxu0 %vm197_vm0, %v222_v31  ;;  %v215_v38 = vld [vmem:[#allocation2 + $0x30] sm:$0xff]  ;;  %v216_v40 = vld [vmem:[#allocation2 + $0x38] sm:$0xff] }
  0x1f   : > { %3596 = vmatmul.mubr.msk.f32.gmra.mxu1 %vm197_vm0, %v212_v32  ;;  %3582 = vmatprep.mubr.msk.f32.mxu0 %vm197_vm0, %v223_v33 }
  0x20   : > { %3598 = vmatprep.mubr.msk.f32.mxu1 %vm197_vm0, %v213_v34  ;;  %3607 = vmatpush3.msra.mxu0 %v495_v29 }
  0x21   : > { %3623 = vmatpush3.msra.mxu1 %v642_v30  ;;  %3636 = vmatprep.subr.mxu0 %v831_v43 }
  0x22   : > { %3583 = vmatmul.mubr.msk.f32.gmra.mxu0 %vm197_vm0, %v224_v35  ;;  %3650 = vmatprep.subr.mxu1 %v822_v44 }
  0x23   : > { %3599 = vmatmul.mubr.msk.f32.gmra.mxu1 %vm197_vm0, %v214_v36  ;;  %3585 = vmatprep.mubr.msk.f32.mxu0 %vm197_vm0, %v225_v37 }
  0x24   : > { %3601 = vmatprep.mubr.msk.f32.mxu1 %vm197_vm0, %v215_v38 }
  0x26   : > { %3586 = vmatmul.mubr.msk.f32.gmra.mxu0 %vm197_vm0, %v226_v39 }
  0x27   : > { %3602 = vmatmul.mubr.msk.f32.gmra.mxu1 %vm197_vm0, %v216_v40  ;;  %3608 = vmatprep.mubr.msk.f32.mxu0 %vm197_vm0, %v210_v26 }
  0x28   : > { %3624 = vmatprep.mubr.msk.f32.mxu1 %vm197_vm0, %v220_v25 }
  0x2a   : > { %3609 = vmatmul.mubr.msk.f32.vlgmr.msra.gmra.mxu0 %vm197_vm0, %v211_v27 }
  0x2b   : > { %3625 = vmatmul.mubr.msk.f32.vlgmr.msra.gmra.mxu1 %vm197_vm0, %v221_v28  ;;  %3611 = vmatprep.mubr.msk.f32.mxu0 %vm197_vm0, %v212_v32 }
  0x2c   : > { %3627 = vmatprep.mubr.msk.f32.mxu1 %vm197_vm0, %v222_v31  ;;  %3637 = vmatpush3.msra.mxu0 %v831_v43 }
  0x2d   : > { %3651 = vmatpush3.msra.mxu1 %v822_v44  ;;  %3664 = vmatprep.subr.mxu0 %v4109_v45 }
  0x2e   : > { %3612 = vmatmul.mubr.msk.f32.gmra.mxu0 %vm197_vm0, %v213_v34  ;;  %3678 = vmatprep.subr.mxu1 %v4115_v46 }
  0x2f   : > { %3628 = vmatmul.mubr.msk.f32.gmra.mxu1 %vm197_vm0, %v223_v33  ;;  %3614 = vmatprep.mubr.msk.f32.mxu0 %vm197_vm0, %v214_v36 }
  0x30   : > { %3630 = vmatprep.mubr.msk.f32.mxu1 %vm197_vm0, %v224_v35 }
  0x32   : > { %3615 = vmatmul.mubr.msk.f32.gmra.mxu0 %vm197_vm0, %v215_v38 }
  0x33   : > { %3631 = vmatmul.mubr.msk.f32.gmra.mxu1 %vm197_vm0, %v225_v37  ;;  %3617 = vmatprep.mubr.msk.f32.mxu0 %vm197_vm0, %v216_v40 }
  0x34   : > { %3633 = vmatprep.mubr.msk.f32.mxu1 %vm197_vm0, %v226_v39 }
  0x36   : > { %3618 = vmatmul.mubr.msk.f32.gmra.mxu0 %vm197_vm0, %v494_v41 }
  0x37   : > { %3634 = vmatmul.mubr.msk.f32.gmra.mxu1 %vm197_vm0, %v641_v42 }
  0xda   : > { %v3578_v47 = vpop.f32.mrf.mxu0 }
  0xdb   : > { %v3594_v48 = vpop.f32.mrf.mxu1 }
  0xdc   : > { %v319_v49 = vpop.f32.mrf.mxu0  ;;  %v454_v63 = vadd.f32 %v3594_v48, %v3578_v47 }
  0xdd   : > { %v448_v50 = vpop.f32.mrf.mxu1 }
  0xde   : > { %v3581_v51 = vpop.f32.mrf.mxu0  ;;  %v449_v2 = vadd.f32 %v448_v50, %v319_v49 }
  0xdf   : > { %v3597_v52 = vpop.f32.mrf.mxu1 }
  0xe0   : > { %v329_v53 = vpop.f32.mrf.mxu0  ;;  %v464_v8 = vadd.f32 %v3597_v52, %v3581_v51 }
  0xe1   : > { %v458_v54 = vpop.f32.mrf.mxu1 }
  0xe2   : > { %v3584_v55 = vpop.f32.mrf.mxu0  ;;  %v459_v13 = vadd.f32 %v458_v54, %v329_v53 }
  0xe3   : > { %v3600_v56 = vpop.f32.mrf.mxu1 }
  0xe4   : > { %v339_v57 = vpop.f32.mrf.mxu0  ;;  %v474_v17 = vadd.f32 %v3600_v56, %v3584_v55 }
  0xe5   : > { %v468_v58 = vpop.f32.mrf.mxu1 }
  0xe6   : > { %v3587_v59 = vpop.f32.mrf.mxu0  ;;  %v469_v24 = vadd.f32 %v468_v58, %v339_v57 }
  0xe7   : > { %v3603_v60 = vpop.f32.mrf.mxu1 }
  0xe8   : > { %v349_v61 = vpop.f32.mrf.mxu0  ;;  %v484_v31 = vadd.f32 %v3603_v60, %v3587_v59 }
  0xe9   : > { %v478_v62 = vpop.f32.mrf.mxu1 }
  0xea   : > { %v3610_v0 = vpop.f32.mrf.mxu0  ;;  %v479_v38 = vadd.f32 %v478_v62, %v349_v61  ;;  %v1536_v61 = vld [vmem:[%s4761_s2 + $0x69] sm:$0xff] }
  0xeb   : > { %v3626_v1 = vpop.f32.mrf.mxu1  ;;  %v627_v3 = vadd.f32 %v3610_v0, %v454_v63  ;;  %v1390_v63 = vld [vmem:[%s4761_s2 + $0x61] sm:$0xff] }
  0xec   : > { %v587_v6 = vpop.f32.mrf.mxu0 }
  0xed   : > { %v734_v7 = vpop.f32.mrf.mxu1  ;;  %v774_v9 = vadd.f32 %v3626_v1, %v627_v3  ;;  %v626_v10 = vadd.f32 %v587_v6, %v449_v2 }
  0xee   : > { %v3613_v11 = vpop.f32.mrf.mxu0 }
  0xef   : > { %v3629_v12 = vpop.f32.mrf.mxu1  ;;  %v787_v14 = vadd.f32 %v3264_v5, %v774_v9  ;;  %v773_v15 = vadd.f32 %v734_v7, %v626_v10  ;;  %v629_v16 = vadd.f32 %v3613_v11, %v464_v8 }
  0xf0   : > { %v597_v18 = vpop.f32.mrf.mxu0 }
  0xf1   : > { %v744_v19 = vpop.f32.mrf.mxu1  ;;  %v795_v20 = vmax.f32 %v787_v14, 0.0  ;;  %v786_v21 = vadd.f32 %v3264_v5, %v773_v15  ;;  %v776_v22 = vadd.f32 %v3629_v12, %v629_v16  ;;  %v628_v23 = vadd.f32 %v597_v18, %v459_v13  ;;  %v1828_v13 = vld [vmem:[%s4761_s2 + $0x79] sm:$0xff]  ;;  %v1682_v15 = vld [vmem:[%s4761_s2 + $0x71] sm:$0xff] }
  0xf2   : > { %v3616_v25 = vpop.f32.mrf.mxu0 }
  0xf3   : > { %v3632_v26 = vpop.f32.mrf.mxu1  ;;  %804 = vst.msk [vmem:[#allocation3 + $0x8] sm:$0xff] %vm802_vm1, %v795_v20  ;;  %v794_v27 = vmax.f32 %v786_v21, 0.0  ;;  %v789_v28 = vadd.f32 %v3264_v5, %v776_v22  ;;  %v775_v29 = vadd.f32 %v744_v19, %v628_v23  ;;  %v631_v30 = vadd.f32 %v3616_v25, %v474_v17  ;;  %v1243_v20 = vld [vmem:[#allocation3 + $0x40] sm:$0xff]  ;;  %v1974_v23 = vld [vmem:[%s4761_s2 + $0x81] sm:$0xff] }
  0xf4   : > { %v607_v32 = vpop.f32.mrf.mxu0  ;;  %v1389_v25 = vld [vmem:[#allocation3 + $0x41] sm:$0xff] }
  0xf5   : > { %v754_v33 = vpop.f32.mrf.mxu1  ;;  %803 = vst.msk [vmem:[#allocation3] sm:$0xff] %vm802_vm1, %v794_v27  ;;  %v797_v34 = vmax.f32 %v789_v28, 0.0  ;;  %v788_v35 = vadd.f32 %v3264_v5, %v775_v29  ;;  %v778_v36 = vadd.f32 %v3632_v26, %v631_v30  ;;  %v630_v37 = vadd.f32 %v607_v32, %v469_v24  ;;  %v1535_v24 = vld [vmem:[#allocation3 + $0x42] sm:$0xff]  ;;  %v1973_v28 = vld [vmem:[#allocation3 + $0x4a] sm:$0xff] }
  0xf6   : > { %v3619_v39 = vpop.f32.mrf.mxu0  ;;  %v1827_v26 = vld [vmem:[#allocation3 + $0x49] sm:$0xff] }
  0xf7   : > { %v3635_v40 = vpop.f32.mrf.mxu1  ;;  %806 = vst.msk [vmem:[#allocation3 + $0x18] sm:$0xff] %vm802_vm1, %v797_v34  ;;  %v796_v41 = vmax.f32 %v788_v35, 0.0  ;;  %v791_v42 = vadd.f32 %v3264_v5, %v778_v36  ;;  %v777_v43 = vadd.f32 %v754_v33, %v630_v37  ;;  %v633_v44 = vadd.f32 %v3619_v39, %v484_v31  ;;  %v1681_v27 = vld [vmem:[#allocation3 + $0x48] sm:$0xff]  ;;  %v2170_v33 = vld [vmem:[%s4761_s2 + $0xb2] sm:$0xff]  ;;  %v2169_v35 = vld [vmem:[%s4761_s2 + $0xaa] sm:$0xff] }
  0xf8   : > { %v617_v47 = vpop.f32.mrf.mxu0  ;;  %v2172_v29 = vld [vmem:[%s4761_s2 + $0xc2] sm:$0xff]  ;;  %v2171_v31 = vld [vmem:[%s4761_s2 + $0xba] sm:$0xff]  ;;  %v2178_v34 = vld [vmem:[%s4761_s2 + $0xf2] sm:$0xff] }
  0xf9   : > { %805 = vst.msk [vmem:[#allocation3 + $0x10] sm:$0xff] %vm802_vm1, %v796_v41  ;;  %v799_v48 = vmax.f32 %v791_v42, 0.0  ;;  %v790_v49 = vadd.f32 %v3264_v5, %v777_v43  ;;  %v780_v50 = vadd.f32 %v3635_v40, %v633_v44  ;;  %v632_v51 = vadd.f32 %v617_v47, %v479_v38  ;;  %v764_v52 = vpop.f32.mrf.mxu1  ;;  %v2180_v30 = vld [vmem:[%s4761_s2 + $0x102] sm:$0xff]  ;;  %v2179_v32 = vld [vmem:[%s4761_s2 + $0xfa] sm:$0xff]  ;;  %v2177_v36 = vld [vmem:[%s4761_s2 + $0xea] sm:$0xff] }
  0xfa   : > { %v815_v60 = vld [vmem:[#allocation3 + $0x8] sm:$0xff]  ;;  %v2166_v41 = vld [vmem:[%s4761_s2 + $0x92] sm:$0xff]  ;;  %v2165_v43 = vld [vmem:[%s4761_s2 + $0x8a] sm:$0xff] }
  0xfb   : > { %808 = vst.msk [vmem:[#allocation3 + $0x28] sm:$0xff] %vm802_vm1, %v799_v48  ;;  %v798_v53 = vmax.f32 %v790_v49, 0.0  ;;  %v793_v54 = vadd.f32 %v3264_v5, %v780_v50  ;;  %v779_v55 = vadd.f32 %v764_v52, %v632_v51  ;;  %v2168_v37 = vld [vmem:[%s4761_s2 + $0xa2] sm:$0xff]  ;;  %v2167_v39 = vld [vmem:[%s4761_s2 + $0x9a] sm:$0xff]  ;;  %v2174_v42 = vld [vmem:[%s4761_s2 + $0xd2] sm:$0xff] }
  0xfc   : > { %v823_v56 = vld [vmem:[#allocation3 + $0x1] sm:$0xff]  ;;  %v2176_v38 = vld [vmem:[%s4761_s2 + $0xe2] sm:$0xff] }
  0xfd   : > { %v814_v57 = vld [vmem:[#allocation3] sm:$0xff]  ;;  %807 = vst.msk [vmem:[#allocation3 + $0x20] sm:$0xff] %vm802_vm1, %v798_v53  ;;  %v801_v58 = vmax.f32 %v793_v54, 0.0  ;;  %v792_v59 = vadd.f32 %v3264_v5, %v779_v55  ;;  %3638 = vmatprep.mubr.msk.f32.mxu0 %vm802_vm1, %v823_v56 }
  0xfe   : > { %3652 = vmatprep.mubr.msk.f32.mxu1 %vm802_vm1, %v814_v57  ;;  %v1090_v12 = vld [vmem:[#allocation3 + $0x2] sm:$0xff] }
  0xff   : > { %3653 = vmatmul.mubr.msk.f32.vlgmr.msra.gmra.mxu1 %vm802_vm1, %v815_v60  ;;  %810 = vst.msk [vmem:[#allocation3 + $0x38] sm:$0xff] %vm802_vm1, %v801_v58  ;;  %v800_v62 = vmax.f32 %v792_v59, 0.0  ;;  %v2175_v40 = vld [vmem:[%s4761_s2 + $0xda] sm:$0xff] }
 0x100   : > { %3679 = vmatpush3.msra.mxu1 %v4115_v46  ;;  %v824_v0 = vld [vmem:[#allocation3 + $0x9] sm:$0xff]  ;;  %v4140_v2 = vld [vmem:[#allocation3 + $0x11] sm:$0xff] }
 0x101   : > { %v4138_v1 = vld [vmem:[#allocation3 + $0x10] sm:$0xff]  ;;  %3706 = vmatprep.subr.mxu1 %v1536_v61  ;;  %809 = vst.msk [vmem:[#allocation3 + $0x30] sm:$0xff] %vm802_vm1, %v800_v62  ;;  %3639 = vmatmul.mubr.msk.f32.vlgmr.msra.gmra.mxu0 %vm802_vm1, %v824_v0  ;;  %v4149_v46 = vld [vmem:[#allocation3 + $0x18] sm:$0xff] }
 0x102   : > { %3655 = vmatprep.mubr.msk.f32.mxu1 %vm802_vm1, %v4138_v1  ;;  %3665 = vmatpush3.msra.mxu0 %v4109_v45  ;;  %v4165_v45 = vld [vmem:[#allocation3 + $0x28] sm:$0xff]  ;;  %v4202_v16 = vld [vmem:[#allocation3 + $0x12] sm:$0xff] }
 0x103   : > { %3641 = vmatprep.mubr.msk.f32.mxu0 %vm802_vm1, %v4140_v2  ;;  %3656 = vmatmul.mubr.msk.f32.gmra.mxu1 %vm802_vm1, %v4149_v46  ;;  %v1091_v14 = vld [vmem:[#allocation3 + $0xa] sm:$0xff] }
 0x104   : > { %3692 = vmatprep.subr.mxu0 %v1390_v63  ;;  %v4153_v3 = vld [vmem:[#allocation3 + $0x19] sm:$0xff]  ;;  %v4157_v6 = vld [vmem:[#allocation3 + $0x21] sm:$0xff] }
 0x105   : > { %v4155_v5 = vld [vmem:[#allocation3 + $0x20] sm:$0xff]  ;;  %3642 = vmatmul.mubr.msk.f32.gmra.mxu0 %vm802_vm1, %v4153_v3 }
 0x106   : > { %3658 = vmatprep.mubr.msk.f32.mxu1 %vm802_vm1, %v4155_v5  ;;  %3644 = vmatprep.mubr.msk.f32.mxu0 %vm802_vm1, %v4157_v6  ;;  %v4181_v10 = vld [vmem:[#allocation3 + $0x38] sm:$0xff]  ;;  %v1094_v18 = vld [vmem:[#allocation3 + $0x22] sm:$0xff] }
 0x107   : > { %3659 = vmatmul.mubr.msk.f32.gmra.mxu1 %vm802_vm1, %v4165_v45  ;;  %v4186_v11 = vld [vmem:[#allocation3 + $0x39] sm:$0xff] }
 0x108   : > { %v4169_v7 = vld [vmem:[#allocation3 + $0x29] sm:$0xff]  ;;  %v4173_v9 = vld [vmem:[#allocation3 + $0x31] sm:$0xff]  ;;  %v1093_v17 = vld [vmem:[#allocation3 + $0x1a] sm:$0xff] }
 0x109   : > { %v4171_v8 = vld [vmem:[#allocation3 + $0x30] sm:$0xff]  ;;  %3645 = vmatmul.mubr.msk.f32.gmra.mxu0 %vm802_vm1, %v4169_v7  ;;  %v1097_v22 = vld [vmem:[#allocation3 + $0x3a] sm:$0xff] }
 0x10a   : > { %3661 = vmatprep.mubr.msk.f32.mxu1 %vm802_vm1, %v4171_v8  ;;  %3647 = vmatprep.mubr.msk.f32.mxu0 %vm802_vm1, %v4173_v9  ;;  %v1095_v19 = vld [vmem:[#allocation3 + $0x2a] sm:$0xff]  ;;  %v1096_v21 = vld [vmem:[#allocation3 + $0x32] sm:$0xff] }
 0x10b   : > { %3662 = vmatmul.mubr.msk.f32.gmra.mxu1 %vm802_vm1, %v4181_v10 }
 0x10c   : > { %3680 = vmatprep.mubr.msk.f32.mxu1 %vm802_vm1, %v815_v60 }
 0x10d   : > { %3648 = vmatmul.mubr.msk.f32.gmra.mxu0 %vm802_vm1, %v4186_v11 }
 0x10e   : > { %3666 = vmatprep.mubr.msk.f32.mxu0 %vm802_vm1, %v1090_v12 }
 0x10f   : > { %3681 = vmatmul.mubr.msk.f32.vlgmr.msra.gmra.mxu1 %vm802_vm1, %v4138_v1 }
 0x110   : > { %3683 = vmatprep.mubr.msk.f32.mxu1 %vm802_vm1, %v4149_v46  ;;  %3707 = vmatpush3.msra.mxu1 %v1536_v61 }
 0x111   : > { %3667 = vmatmul.mubr.msk.f32.vlgmr.msra.gmra.mxu0 %vm802_vm1, %v1091_v14  ;;  %3734 = vmatprep.subr.mxu1 %v1828_v13 }
 0x112   : > { %3693 = vmatpush3.msra.mxu0 %v1390_v63  ;;  %3669 = vmatprep.mubr.msk.f32.mxu0 %vm802_vm1, %v4202_v16 }
 0x113   : > { %3684 = vmatmul.mubr.msk.f32.gmra.mxu1 %vm802_vm1, %v4155_v5  ;;  %3720 = vmatprep.subr.mxu0 %v1682_v15 }
 0x114   : > { %3686 = vmatprep.mubr.msk.f32.mxu1 %vm802_vm1, %v4165_v45 }
 0x115   : > { %3670 = vmatmul.mubr.msk.f32.gmra.mxu0 %vm802_vm1, %v1093_v17 }
 0x116   : > { %3672 = vmatprep.mubr.msk.f32.mxu0 %vm802_vm1, %v1094_v18 }
 0x117   : > { %3687 = vmatmul.mubr.msk.f32.gmra.mxu1 %vm802_vm1, %v4171_v8 }
 0x118   : > { %3689 = vmatprep.mubr.msk.f32.mxu1 %vm802_vm1, %v4181_v10 }
 0x119   : > { %3673 = vmatmul.mubr.msk.f32.gmra.mxu0 %vm802_vm1, %v1095_v19 }
 0x11a   : > { %3675 = vmatprep.mubr.msk.f32.mxu0 %vm802_vm1, %v1096_v21 }
 0x11b   : > { %3690 = vmatmul.mubr.msk.f32.gmra.mxu1 %vm802_vm1, %v1243_v20 }
 0x11c   : > { %3708 = vmatprep.mubr.msk.f32.mxu1 %vm802_vm1, %v1091_v14 }
 0x11d   : > { %3676 = vmatmul.mubr.msk.f32.gmra.mxu0 %vm802_vm1, %v1097_v22 }
 0x11e   : > { %3694 = vmatprep.mubr.msk.f32.mxu0 %vm802_vm1, %v824_v0 }
 0x11f   : > { %3709 = vmatmul.mubr.msk.f32.vlgmr.msra.gmra.mxu1 %vm802_vm1, %v4202_v16 }
 0x120   : > { %3711 = vmatprep.mubr.msk.f32.mxu1 %vm802_vm1, %v1093_v17  ;;  %3735 = vmatpush3.msra.mxu1 %v1828_v13 }
 0x121   : > { %3695 = vmatmul.mubr.msk.f32.vlgmr.msra.gmra.mxu0 %vm802_vm1, %v4140_v2  ;;  %3762 = vmatprep.subr.mxu1 %v4763_v4 }
 0x122   : > { %3721 = vmatpush3.msra.mxu0 %v1682_v15  ;;  %3697 = vmatprep.mubr.msk.f32.mxu0 %vm802_vm1, %v4153_v3 }
 0x123   : > { %3712 = vmatmul.mubr.msk.f32.gmra.mxu1 %vm802_vm1, %v1094_v18  ;;  %3748 = vmatprep.subr.mxu0 %v1974_v23 }
 0x124   : > { %3714 = vmatprep.mubr.msk.f32.mxu1 %vm802_vm1, %v1095_v19 }
 0x125   : > { %3698 = vmatmul.mubr.msk.f32.gmra.mxu0 %vm802_vm1, %v4157_v6 }
 0x126   : > { %3700 = vmatprep.mubr.msk.f32.mxu0 %vm802_vm1, %v4169_v7 }
 0x127   : > { %3715 = vmatmul.mubr.msk.f32.gmra.mxu1 %vm802_vm1, %v1096_v21 }
 0x128   : > { %3717 = vmatprep.mubr.msk.f32.mxu1 %vm802_vm1, %v1097_v22 }
 0x129   : > { %3701 = vmatmul.mubr.msk.f32.gmra.mxu0 %vm802_vm1, %v4173_v9 }
 0x12a   : > { %3703 = vmatprep.mubr.msk.f32.mxu0 %vm802_vm1, %v4186_v11 }
 0x12b   : > { %3718 = vmatmul.mubr.msk.f32.gmra.mxu1 %vm802_vm1, %v1535_v24 }
 0x12c   : > { %3736 = vmatprep.mubr.msk.f32.mxu1 %vm802_vm1, %v4140_v2 }
 0x12d   : > { %3704 = vmatmul.mubr.msk.f32.gmra.mxu0 %vm802_vm1, %v1389_v25 }
 0x12e   : > { %3722 = vmatprep.mubr.msk.f32.mxu0 %vm802_vm1, %v4138_v1 }
 0x12f   : > { %3737 = vmatmul.mubr.msk.f32.vlgmr.msra.gmra.mxu1 %vm802_vm1, %v4153_v3 }
 0x130   : > { %3739 = vmatprep.mubr.msk.f32.mxu1 %vm802_vm1, %v4157_v6  ;;  %3763 = vmatpush3.msra.mxu1 %v2180_v30 }
 0x131   : > { %3723 = vmatmul.mubr.msk.f32.vlgmr.msra.gmra.mxu0 %vm802_vm1, %v4149_v46  ;;  %3764 = vmatprep.subr.mxu1 %v4763_v4 }
 0x132   : > { %3749 = vmatpush3.msra.mxu0 %v1974_v23  ;;  %3725 = vmatprep.mubr.msk.f32.mxu0 %vm802_vm1, %v4155_v5 }
 0x133   : > { %3740 = vmatmul.mubr.msk.f32.gmra.mxu1 %vm802_vm1, %v4169_v7  ;;  %3781 = vmatprep.subr.mxu0 %v4763_v4 }
 0x134   : > { %3742 = vmatprep.mubr.msk.f32.mxu1 %vm802_vm1, %v4173_v9  ;;  %3765 = vmatpush3.msra.mxu1 %v2179_v32 }
 0x135   : > { %3726 = vmatmul.mubr.msk.f32.gmra.mxu0 %vm802_vm1, %v4165_v45  ;;  %3766 = vmatprep.subr.mxu1 %v4763_v4 }
 0x136   : > { %3728 = vmatprep.mubr.msk.f32.mxu0 %vm802_vm1, %v4171_v8  ;;  %3767 = vmatpush3.msra.mxu1 %v2178_v34 }
 0x137   : > { %3743 = vmatmul.mubr.msk.f32.gmra.mxu1 %vm802_vm1, %v4186_v11  ;;  %3768 = vmatprep.subr.mxu1 %v4763_v4 }
 0x138   : > { %3745 = vmatprep.mubr.msk.f32.mxu1 %vm802_vm1, %v1389_v25  ;;  %3769 = vmatpush3.msra.mxu1 %v2177_v36 }
 0x139   : > { %3729 = vmatmul.mubr.msk.f32.gmra.mxu0 %vm802_vm1, %v4181_v10  ;;  %3770 = vmatprep.subr.mxu1 %v4763_v4 }
 0x13a   : > { %3731 = vmatprep.mubr.msk.f32.mxu0 %vm802_vm1, %v1243_v20  ;;  %3771 = vmatpush3.msra.mxu1 %v2176_v38 }
 0x13b   : > { %3746 = vmatmul.mubr.msk.f32.gmra.mxu1 %vm802_vm1, %v1827_v26  ;;  %3772 = vmatprep.subr.mxu1 %v4763_v4 }
 0x13c   : > { %3773 = vmatpush3.msra.mxu1 %v2175_v40  ;;  %3778 = vmatprep.mubr.msk.f32.mxu1 %vm3991_vm2, %v4763_v4 }
 0x13d   : > { %3732 = vmatmul.mubr.msk.f32.gmra.mxu0 %vm802_vm1, %v1681_v27  ;;  %3774 = vmatprep.subr.mxu1 %v4763_v4 }
 0x13e   : > { %3750 = vmatprep.mubr.msk.f32.mxu0 %vm802_vm1, %v4202_v16  ;;  %3775 = vmatpush3.msra.mxu1 %v2174_v42 }
 0x13f   : > { %3776 = vmatprep.subr.mxu1 %v4763_v4 }
 0x141   : > { %3751 = vmatmul.mubr.msk.f32.vlgmr.msra.gmra.mxu0 %vm802_vm1, %v1093_v17 }
 0x142   : > { %3753 = vmatprep.mubr.msk.f32.mxu0 %vm802_vm1, %v1094_v18  ;;  %3782 = vmatpush3.msra.mxu0 %v2172_v29 }
 0x143   : > { %3783 = vmatprep.subr.mxu0 %v4763_v4 }
 0x144   : > { %3784 = vmatpush3.msra.mxu0 %v2171_v31 }
 0x145   : > { %3754 = vmatmul.mubr.msk.f32.gmra.mxu0 %vm802_vm1, %v1095_v19  ;;  %3785 = vmatprep.subr.mxu0 %v4763_v4 }
 0x146   : > { %3756 = vmatprep.mubr.msk.f32.mxu0 %vm802_vm1, %v1096_v21  ;;  %3786 = vmatpush3.msra.mxu0 %v2170_v33 }
 0x147   : > { %3787 = vmatprep.subr.mxu0 %v4763_v4 }
 0x148   : > { %3788 = vmatpush3.msra.mxu0 %v2169_v35 }
 0x149   : > { %3757 = vmatmul.mubr.msk.f32.gmra.mxu0 %vm802_vm1, %v1097_v22  ;;  %3789 = vmatprep.subr.mxu0 %v4763_v4 }
 0x14a   : > { %3759 = vmatprep.mubr.msk.f32.mxu0 %vm802_vm1, %v1535_v24  ;;  %3790 = vmatpush3.msra.mxu0 %v2168_v37 }
 0x14b   : > { %3791 = vmatprep.subr.mxu0 %v4763_v4 }
 0x14c   : > { %3792 = vmatpush3.msra.mxu0 %v2167_v39 }
 0x14d   : > { %3760 = vmatmul.mubr.msk.f32.gmra.mxu0 %vm802_vm1, %v1973_v28  ;;  %3793 = vmatprep.subr.mxu0 %v4763_v4 }
 0x14e   : > { %3794 = vmatpush3.msra.mxu0 %v2166_v41  ;;  %3797 = vmatprep.mubr.msk.f32.mxu0 %vm3991_vm2, %v4763_v4 }
 0x14f   : > { %3795 = vmatprep.subr.mxu0 %v4763_v4 }
 0x150   : > { %3796 = vmatpush3.msra.mxu0 %v2165_v43 }
 0x151   : > { %3819 = vmatprep.subr.mxu0 %v4763_v4 }
 0x1bf   : > { %v3654_v44 = vpop.f32.mrf.mxu1 }
 0x1c1   : > { %v1051_v47 = vpop.f32.mrf.mxu1  ;;  %v3640_v48 = vpop.f32.mrf.mxu0 }
 0x1c2   : > { %v1057_v27 = vadd.f32 %v3654_v44, %v3640_v48 }
 0x1c3   : > { %v3657_v49 = vpop.f32.mrf.mxu1  ;;  %v922_v50 = vpop.f32.mrf.mxu0 }
 0x1c4   : > { %v1052_v28 = vadd.f32 %v1051_v47, %v922_v50 }
 0x1c5   : > { %v1061_v51 = vpop.f32.mrf.mxu1  ;;  %v3643_v52 = vpop.f32.mrf.mxu0 }
 0x1c6   : > { %v1067_v41 = vadd.f32 %v3657_v49, %v3643_v52 }
 0x1c7   : > { %v4349_v53 = vpop.f32.mrf.mxu1  ;;  %v932_v54 = vpop.f32.mrf.mxu0 }
 0x1c8   : > { %v1062_v34 = vadd.f32 %v1061_v51, %v932_v54 }
 0x1c9   : > { %v1071_v55 = vpop.f32.mrf.mxu1  ;;  %v4351_v56 = vpop.f32.mrf.mxu0 }
 0x1ca   : > { %v1077_v49 = vadd.f32 %v4349_v53, %v4351_v56 }
 0x1cb   : > { %v4353_v57 = vpop.f32.mrf.mxu1  ;;  %v942_v58 = vpop.f32.mrf.mxu0 }
 0x1cd   : > { %v4355_v59 = vpop.f32.mrf.mxu1  ;;  %v4357_v60 = vpop.f32.mrf.mxu0 }
 0x1cf   : > { %v3682_v61 = vpop.f32.mrf.mxu1  ;;  %v4359_v62 = vpop.f32.mrf.mxu0 }
 0x1d1   : > { %v1335_v63 = vpop.f32.mrf.mxu1  ;;  %v3668_v0 = vpop.f32.mrf.mxu0 }
 0x1d2   : > { %v1229_v31 = vadd.f32 %v3668_v0, %v1057_v27  ;;  %v1072_v0 = vadd.f32 %v1071_v55, %v942_v58 }
 0x1d3   : > { %v3685_v1 = vpop.f32.mrf.mxu1  ;;  %v1189_v2 = vpop.f32.mrf.mxu0 }
 0x1d4   : > { %v1228_v32 = vadd.f32 %v1189_v2, %v1052_v28  ;;  %v1375_v38 = vadd.f32 %v3682_v61, %v1229_v31 }
 0x1d5   : > { %v1345_v46 = vpop.f32.mrf.mxu1  ;;  %v3671_v3 = vpop.f32.mrf.mxu0 }
 0x1d6   : > { %v1374_v39 = vadd.f32 %v1335_v63, %v1228_v32  ;;  %v1231_v47 = vadd.f32 %v3671_v3, %v1067_v41 }
 0x1d7   : > { %v4361_v5 = vpop.f32.mrf.mxu1  ;;  %v1199_v6 = vpop.f32.mrf.mxu0 }
 0x1d8   : > { %v1230_v37 = vadd.f32 %v1199_v6, %v1062_v34  ;;  %v1377_v61 = vadd.f32 %v3685_v1, %v1231_v47 }
 0x1d9   : > { %v1355_v45 = vpop.f32.mrf.mxu1  ;;  %v3674_v7 = vpop.f32.mrf.mxu0 }
 0x1da   : > { %v1376_v48 = vadd.f32 %v1345_v46, %v1230_v37  ;;  %v1233_v3 = vadd.f32 %v3674_v7, %v1077_v49  ;;  %v3337_v7 = vld [vmem:[%s4761_s2 + $0x89] ss:$0 sm:$0xff] }
 0x1db   : > { %v4363_v8 = vpop.f32.mrf.mxu1  ;;  %v1209_v9 = vpop.f32.mrf.mxu0 }
 0x1dc   : > { %v1232_v6 = vadd.f32 %v1209_v9, %v1072_v0  ;;  %v1379_v53 = vadd.f32 %v4361_v5, %v1233_v3  ;;  %v2173_v5 = vld [vmem:[%s4761_s2 + $0xca] sm:$0xff] }
 0x1dd   : > { %v4365_v10 = vpop.f32.mrf.mxu1  ;;  %v4367_v11 = vpop.f32.mrf.mxu0  ;;  %3777 = vmatpush3.msra.mxu1 %v2173_v5  ;;  %v2329_v5 = vld [vmem:[%s4761_s2 + $0x112] sm:$0xff] }
 0x1de   : > { %v1378_v55 = vadd.f32 %v1355_v45, %v1232_v6 }
 0x1df   : > { %v3710_v12 = vpop.f32.mrf.mxu1  ;;  %v4369_v13 = vpop.f32.mrf.mxu0 }
 0x1e1   : > { %v1627_v14 = vpop.f32.mrf.mxu1  ;;  %v3696_v15 = vpop.f32.mrf.mxu0 }
 0x1e2   : > { %v1521_v42 = vadd.f32 %v3696_v15, %v1375_v38 }
 0x1e3   : > { %v3713_v16 = vpop.f32.mrf.mxu1  ;;  %v1481_v17 = vpop.f32.mrf.mxu0 }
 0x1e4   : > { %v1520_v43 = vadd.f32 %v1481_v17, %v1374_v39  ;;  %v1667_v27 = vadd.f32 %v3710_v12, %v1521_v42  ;;  %v4765_v42 = vmov 0.0  }
 0x1e5   : > { %v1637_v18 = vpop.f32.mrf.mxu1  ;;  %v3699_v19 = vpop.f32.mrf.mxu0  ;;  %3800 = vmatprep.subr.mxu1 %v4765_v42 }
 0x1e6   : > { %v1666_v51 = vadd.f32 %v1627_v14, %v1520_v43  ;;  %v1523_v15 = vadd.f32 %v3699_v19, %v1377_v61 }
 0x1e7   : > { %v1491_v20 = vpop.f32.mrf.mxu0  ;;  %v4371_v21 = vpop.f32.mrf.mxu1 }
 0x1e8   : > { %v1522_v2 = vadd.f32 %v1491_v20, %v1376_v48  ;;  %v1082_v20 = vadd.f32 %v4355_v59, %v4359_v62  ;;  %v1087_v59 = vadd.f32 %v4353_v57, %v4357_v60 }
 0x1e9   : > { %v4373_v22 = vpop.f32.mrf.mxu0  ;;  %v4375_v24 = vpop.f32.mrf.mxu1 }
 0x1ea   : > { %v1668_v17 = vadd.f32 %v1637_v18, %v1522_v2  ;;  %v1234_v45 = vadd.f32 %v4369_v13, %v1082_v20  ;;  %v1525_v62 = vadd.f32 %v4373_v22, %v1379_v53  ;;  %v1235_v13 = vadd.f32 %v4367_v11, %v1087_v59  ;;  %v2416_v53 = vld [vmem:[%s4761_s2 + $0x17a] sm:$0xff] }
 0x1eb   : > { %v1501_v23 = vpop.f32.mrf.mxu0  ;;  %v4381_v29 = vpop.f32.mrf.mxu1  ;;  %v2412_v59 = vld [vmem:[%s4761_s2 + $0x15a] sm:$0xff] }
 0x1ec   : > { %v1524_v1 = vadd.f32 %v1501_v23, %v1378_v55  ;;  %v1380_v57 = vadd.f32 %v4365_v10, %v1234_v45  ;;  %v1671_v43 = vadd.f32 %v4371_v21, %v1525_v62  ;;  %v1381_v2 = vadd.f32 %v4363_v8, %v1235_v13  ;;  %v2414_v45 = vld [vmem:[%s4761_s2 + $0x16a] sm:$0xff]  ;;  %v2330_v62 = vld [vmem:[%s4761_s2 + $0x11a] sm:$0xff] }
 0x1ed   : > { %v4377_v25 = vpop.f32.mrf.mxu0  ;;  %v4383_v35 = vpop.f32.mrf.mxu1 }
 0x1ee   : > { %v1670_v23 = vadd.f32 %v4375_v24, %v1524_v1  ;;  %v1527_v10 = vadd.f32 %v4377_v25, %v1381_v2  ;;  %v2494_v2 = vld [vmem:[%s4761_s2 + $0x19a] sm:$0xff] }
 0x1ef   : > { %v4379_v26 = vpop.f32.mrf.mxu0  ;;  %v3738_v4 = vpop.f32.mrf.mxu1 }
 0x1f0   : > { %v1526_v47 = vadd.f32 %v4379_v26, %v1380_v57  ;;  %v1673_v8 = vadd.f32 %v4381_v29, %v1527_v10  ;;  %v2498_v57 = vld [vmem:[%s4761_s2 + $0x1ba] sm:$0xff]  ;;  %v2492_v10 = vld [vmem:[%s4761_s2 + $0x18a] sm:$0xff] }
 0x1f1   : > { %v3724_v30 = vpop.f32.mrf.mxu0  ;;  %v1919_v54 = vpop.f32.mrf.mxu1 }
 0x1f2   : > { %v1813_v63 = vadd.f32 %v3724_v30, %v1667_v27  ;;  %v1669_v30 = vadd.f32 %v3713_v16, %v1523_v15  ;;  %v1672_v6 = vadd.f32 %v4383_v35, %v1526_v47  ;;  %v2496_v47 = vld [vmem:[%s4761_s2 + $0x1aa] sm:$0xff] }
 0x1f3   : > { %v1773_v33 = vpop.f32.mrf.mxu0  ;;  %v3741_v46 = vpop.f32.mrf.mxu1 }
 0x1f4   : > { %v1812_v31 = vadd.f32 %v1773_v33, %v1666_v51  ;;  %v1959_v12 = vadd.f32 %v3738_v4, %v1813_v63 }
 0x1f5   : > { %v3727_v36 = vpop.f32.mrf.mxu0  ;;  %v1929_v56 = vpop.f32.mrf.mxu1 }
 0x1f6   : > { %v1958_v14 = vadd.f32 %v1919_v54, %v1812_v31  ;;  %v1815_v4 = vadd.f32 %v3727_v36, %v1669_v30 }
 0x1f7   : > { %v1783_v40 = vpop.f32.mrf.mxu0  ;;  %v3744_v36 = vpop.f32.mrf.mxu1 }
 0x1f8   : > { %v1814_v58 = vadd.f32 %v1783_v40, %v1668_v17  ;;  %v1961_v22 = vadd.f32 %v3741_v46, %v1815_v4  ;;  %v2332_v4 = vld [vmem:[%s4761_s2 + $0x12a] sm:$0xff] }
 0x1f9   : > { %v4385_v44 = vpop.f32.mrf.mxu0  ;;  %v1939_v27 = vpop.f32.mrf.mxu1 }
 0x1fa   : > { %v1960_v18 = vadd.f32 %v1929_v56, %v1814_v58  ;;  %v1817_v51 = vadd.f32 %v4385_v44, %v1671_v43  ;;  %v2334_v56 = vld [vmem:[%s4761_s2 + $0x13a] sm:$0xff]  ;;  %v2578_v43 = vld [vmem:[%s4761_s2 + $0x1ea] sm:$0xff] }
 0x1fb   : > { %v1793_v50 = vpop.f32.mrf.mxu0 }
 0x1fc   : > { %v1816_v60 = vadd.f32 %v1793_v50, %v1670_v23  ;;  %v3747_v50 = vpop.f32.mrf.mxu1  ;;  %v1963_v49 = vadd.f32 %v3744_v36, %v1817_v51  ;;  %v2410_v23 = vld [vmem:[%s4761_s2 + $0x14a] sm:$0xff]  ;;  %v2499_v36 = vld [vmem:[%s4761_s2 + $0x1c2] sm:$0xff] }
 0x1fd   : > { %v4387_v28 = vpop.f32.mrf.mxu0  ;;  %v2574_v51 = vld [vmem:[%s4761_s2 + $0x1ca] sm:$0xff] }
 0x1fe   : > { %v1962_v54 = vadd.f32 %v1939_v27, %v1816_v60  ;;  %v1949_v15 = vpop.f32.mrf.mxu1  ;;  %v2579_v60 = vld [vmem:[%s4761_s2 + $0x1f2] sm:$0xff] }
 0x1ff   : > { %v1803_v52 = vpop.f32.mrf.mxu0  ;;  %v2575_v27 = vld [vmem:[%s4761_s2 + $0x1d2] sm:$0xff] }
 0x200   : > { %v1818_v31 = vadd.f32 %v1803_v52, %v1672_v6 }
 0x201   : > { %v3752_v32 = vpop.f32.mrf.mxu0 }
 0x202   : > { %v2105_v33 = vadd.f32 %v3752_v32, %v1959_v12  ;;  %v1819_v32 = vadd.f32 %v4387_v28, %v1673_v8  ;;  %v1964_v25 = vadd.f32 %v1949_v15, %v1818_v31  ;;  %v2417_v28 = vld [vmem:[%s4761_s2 + $0x182] sm:$0xff]  ;;  %v2661_v31 = vld [vmem:[%s4761_s2 + $0x232] sm:$0xff]  ;;  %v2660_v15 = vld [vmem:[%s4761_s2 + $0x22a] sm:$0xff] }
 0x203   : > { %v2065_v9 = vpop.f32.mrf.mxu0  ;;  %v2741_v8 = vld [vmem:[%s4761_s2 + $0x262] sm:$0xff] }
 0x204   : > { %v2104_v34 = vadd.f32 %v2065_v9, %v1958_v14  ;;  %v2118_v40 = vadd.f32 %v3337_v7, %v2105_v33  ;;  %v1965_v12 = vadd.f32 %v3747_v50, %v1819_v32  ;;  %v2745_v50 = vld [vmem:[%s4761_s2 + $0x282] sm:$0xff]  ;;  %v2657_v32 = vld [vmem:[%s4761_s2 + $0x212] sm:$0xff] }
 0x205   : > { %v3755_v19 = vpop.f32.mrf.mxu0 }
 0x206   : > { %v2117_v37 = vadd.f32 %v3337_v7, %v2104_v34  ;;  %v2107_v24 = vadd.f32 %v3755_v19, %v1961_v22  ;;  %v2126_v48 = vmax.f32 %v2118_v40, 0.0  ;;  %v2335_v34 = vld [vmem:[%s4761_s2 + $0x142] sm:$0xff]  ;;  %v2415_v19 = vld [vmem:[%s4761_s2 + $0x172] sm:$0xff] }
 0x207   : > { %v2075_v16 = vpop.f32.mrf.mxu0  ;;  %v2581_v40 = vld [vmem:[%s4761_s2 + $0x202] sm:$0xff]  ;;  %v2497_v22 = vld [vmem:[%s4761_s2 + $0x1b2] sm:$0xff] }
 0x208   : > { %v2106_v38 = vadd.f32 %v2075_v16, %v1960_v18  ;;  %v2125_v39 = vmax.f32 %v2117_v37, 0.0  ;;  %v2120_v63 = vadd.f32 %v3337_v7, %v2107_v24  ;;  %v2413_v18 = vld [vmem:[%s4761_s2 + $0x162] sm:$0xff]  ;;  %v2411_v16 = vld [vmem:[%s4761_s2 + $0x152] sm:$0xff] }
 0x209   : > { %v3758_v41 = vpop.f32.mrf.mxu0  ;;  %v2331_v37 = vld [vmem:[%s4761_s2 + $0x122] sm:$0xff] }
 0x20a   : > { %2133 = vxpose.xlu0.b32.start [1/8] (short) (narrow) %v2125_v39, 8  ;;  %v2119_v0 = vadd.f32 %v3337_v7, %v2106_v38  ;;  %v2109_v17 = vadd.f32 %v3758_v41, %v1963_v49  ;;  %v2128_v3 = vmax.f32 %v2120_v63, 0.0  ;;  %v2328_v39 = vld [vmem:[%s4761_s2 + $0x10a] sm:$0xff]  ;;  %v2580_v41 = vld [vmem:[%s4761_s2 + $0x1fa] sm:$0xff]  ;;  %v2577_v24 = vld [vmem:[%s4761_s2 + $0x1e2] sm:$0xff] }
 0x20b   : > { %v2085_v11 = vpop.f32.mrf.mxu0  ;;  %v2662_v63 = vld [vmem:[%s4761_s2 + $0x23a] sm:$0xff]  ;;  %v2742_v49 = vld [vmem:[%s4761_s2 + $0x26a] sm:$0xff] }
 0x20c   : > { %v2108_v61 = vadd.f32 %v2085_v11, %v1962_v54  ;;  %v2127_v21 = vmax.f32 %v2119_v0, 0.0  ;;  %v2122_v58 = vadd.f32 %v3337_v7, %v2109_v17  ;;  %v2576_v0 = vld [vmem:[%s4761_s2 + $0x1da] sm:$0xff]  ;;  %v2493_v11 = vld [vmem:[%s4761_s2 + $0x192] sm:$0xff]  ;;  %v2659_v17 = vld [vmem:[%s4761_s2 + $0x222] sm:$0xff] }
 0x20d   : > { %v3761_v26 = vpop.f32.mrf.mxu0 }
 0x20e   : > { %2134 = vxpose.xlu0.b32.cont [2/8] (short) (narrow) %v2126_v48, 8  ;;  %v2121_v44 = vadd.f32 %v3337_v7, %v2108_v61  ;;  %v2111_v14 = vadd.f32 %v3761_v26, %v1965_v12  ;;  %v2130_v52 = vmax.f32 %v2122_v58, 0.0  ;;  %v2495_v48 = vld [vmem:[%s4761_s2 + $0x1a2] sm:$0xff]  ;;  %v2743_v26 = vld [vmem:[%s4761_s2 + $0x272] sm:$0xff] }
 0x20f   : > { %v2095_v46 = vpop.f32.mrf.mxu0  ;;  %v2663_v61 = vld [vmem:[%s4761_s2 + $0x242] sm:$0xff] }
 0x210   : > { %v2110_v55 = vadd.f32 %v2095_v46, %v1964_v25  ;;  %v2129_v35 = vmax.f32 %v2121_v44, 0.0  ;;  %v2124_v1 = vadd.f32 %v3337_v7, %v2111_v14  ;;  %v2658_v44 = vld [vmem:[%s4761_s2 + $0x21a] sm:$0xff]  ;;  %v2739_v46 = vld [vmem:[%s4761_s2 + $0x252] sm:$0xff]  ;;  %v2738_v25 = vld [vmem:[%s4761_s2 + $0x24a] sm:$0xff] }
 0x212   : > { %2135 = vxpose.xlu0.b32.cont [3/8] (short) (narrow) %v2127_v21, 8  ;;  %v2123_v20 = vadd.f32 %v3337_v7, %v2110_v55  ;;  %v2132_v29 = vmax.f32 %v2124_v1, 0.0  ;;  %v2333_v7 = vld [vmem:[%s4761_s2 + $0x132] sm:$0xff]  ;;  %v2744_v21 = vld [vmem:[%s4761_s2 + $0x27a] sm:$0xff] }
 0x214   : > { %v2131_v9 = vmax.f32 %v2123_v20, 0.0 }
 0x216   : > { %2136 = vxpose.xlu0.b32.cont [4/8] (short) (narrow) %v2128_v3, 8  ;;  %v2740_v3 = vld [vmem:[%s4761_s2 + $0x25a] sm:$0xff] }
 0x21a   : > { %2137 = vxpose.xlu0.b32.cont [5/8] (short) (narrow) %v2129_v35, 8  ;;  %v2656_v35 = vld [vmem:[%s4761_s2 + $0x20a] sm:$0xff] }
 0x21e   : > { %2138 = vxpose.xlu0.b32.cont [6/8] (short) (narrow) %v2130_v52, 8 }
 0x222   : > { %2139 = vxpose.xlu0.b32.cont [7/8] (short) (narrow) %v2131_v9, 8 }
 0x226   : > { %2140 = vxpose.xlu0.b32.end [8/8] (short) (narrow) %v2132_v29, 8 }
 0x286   : > { %v4419_v30 = vpop.trf.xlu0 }
 0x287   : > { %v2182_v33 = vrot.slane %v4419_v30, 1  ;;  %3798 = vmatmul.mubr.msk.f32.vlgmr.msra.gmra.mxu0 %vm2183_vm3, %v4419_v30  ;;  %v2418_v38 = vrot.slane %v4419_v30, 3  ;;  %v2336_v13 = vrot.slane %v4419_v30, 2  ;;  %v2582_v54 = vrot.slane %v4419_v30, 5 }
 0x288   : > { %3820 = vmatpush3.msra.mxu0 %v2417_v28  ;;  %3835 = vmatprep.mubr.msk.f32.mxu0 %vm3991_vm2, %v4765_v42  ;;  %v2500_v6 = vrot.slane %v4419_v30, 4  ;;  %v2746_v55 = vrot.slane %v4419_v30, 7  ;;  %v2664_v58 = vrot.slane %v4419_v30, 6 }
 0x289   : > { %3821 = vmatprep.subr.mxu0 %v4765_v42  ;;  %3779 = vmatmul.mubr.msk.f32.vlgmr.msra.gmra.mxu1 %vm2183_vm3, %v2182_v33 }
 0x28a   : > { %3801 = vmatpush3.msra.mxu1 %v2335_v34  ;;  %3822 = vmatpush3.msra.mxu0 %v2416_v53 }
 0x28b   : > { %3802 = vmatprep.subr.mxu1 %v4765_v42  ;;  %3823 = vmatprep.subr.mxu0 %v4765_v42 }
 0x28c   : > { %3803 = vmatpush3.msra.mxu1 %v2334_v56  ;;  %3824 = vmatpush3.msra.mxu0 %v2415_v19 }
 0x28d   : > { %3804 = vmatprep.subr.mxu1 %v4765_v42  ;;  %3825 = vmatprep.subr.mxu0 %v4765_v42 }
 0x28e   : > { %3805 = vmatpush3.msra.mxu1 %v2333_v7  ;;  %3826 = vmatpush3.msra.mxu0 %v2414_v45 }
 0x28f   : > { %3806 = vmatprep.subr.mxu1 %v4765_v42  ;;  %3827 = vmatprep.subr.mxu0 %v4765_v42 }
 0x290   : > { %3807 = vmatpush3.msra.mxu1 %v2332_v4  ;;  %3828 = vmatpush3.msra.mxu0 %v2413_v18 }
 0x291   : > { %3808 = vmatprep.subr.mxu1 %v4765_v42  ;;  %3829 = vmatprep.subr.mxu0 %v4765_v42 }
 0x292   : > { %3809 = vmatpush3.msra.mxu1 %v2331_v37  ;;  %3830 = vmatpush3.msra.mxu0 %v2412_v59 }
 0x293   : > { %3810 = vmatprep.subr.mxu1 %v4765_v42  ;;  %3831 = vmatprep.subr.mxu0 %v4765_v42 }
 0x294   : > { %3811 = vmatpush3.msra.mxu1 %v2330_v62  ;;  %3832 = vmatpush3.msra.mxu0 %v2411_v16 }
 0x295   : > { %3812 = vmatprep.subr.mxu1 %v4765_v42  ;;  %3833 = vmatprep.subr.mxu0 %v4765_v42 }
 0x296   : > { %3813 = vmatpush3.msra.mxu1 %v2329_v5  ;;  %3834 = vmatpush3.msra.mxu0 %v2410_v23  ;;  %v2820_v5 = vld [vmem:[%s4761_s2 + $0x28a] sm:$0x1] }
 0x297   : > { %3814 = vmatprep.subr.mxu1 %v4765_v42  ;;  %3836 = vmatmul.mubr.msk.f32.vlgmr.msra.gmra.mxu0 %vm2183_vm3, %v2418_v38 }
 0x298   : > { %3857 = vmatprep.subr.mxu0 %v4765_v42  ;;  %3815 = vmatpush3.msra.mxu1 %v2328_v39 }
 0x299   : > { %3816 = vmatprep.mubr.msk.f32.mxu1 %vm3991_vm2, %v4765_v42  ;;  %3858 = vmatpush3.msra.mxu0 %v2581_v40 }
 0x29a   : > { %3817 = vmatmul.mubr.msk.f32.vlgmr.msra.gmra.mxu1 %vm2183_vm3, %v2336_v13  ;;  %3838 = vmatprep.subr.mxu1 %v4765_v42 }
 0x29b   : > { %3859 = vmatprep.subr.mxu0 %v4765_v42  ;;  %3839 = vmatpush3.msra.mxu1 %v2499_v36 }
 0x29c   : > { %3860 = vmatpush3.msra.mxu0 %v2580_v41  ;;  %3840 = vmatprep.subr.mxu1 %v4765_v42 }
 0x29d   : > { %3861 = vmatprep.subr.mxu0 %v4765_v42  ;;  %3841 = vmatpush3.msra.mxu1 %v2498_v57 }
 0x29e   : > { %3862 = vmatpush3.msra.mxu0 %v2579_v60  ;;  %3842 = vmatprep.subr.mxu1 %v4765_v42  ;;  %v2847_v60 = vld [vmem:[%s4761_s2 + $0x2ad] sm:$0xf] }
 0x29f   : > { %3863 = vmatprep.subr.mxu0 %v4765_v42  ;;  %3843 = vmatpush3.msra.mxu1 %v2497_v22  ;;  %v2846_v22 = vld [vmem:[%s4761_s2 + $0x2a5] sm:$0xff] }
 0x2a0   : > { %3864 = vmatpush3.msra.mxu0 %v2578_v43  ;;  %3844 = vmatprep.subr.mxu1 %v4765_v42  ;;  %v2842_v43 = vld [vmem:[%s177_s15] sm:$0x1] }
 0x2a1   : > { %3865 = vmatprep.subr.mxu0 %v4765_v42  ;;  %3845 = vmatpush3.msra.mxu1 %v2496_v47  ;;  %v2845_v47 = vld [vmem:[%s4761_s2 + $0x29d] sm:$0xff] }
 0x2a2   : > { %3866 = vmatpush3.msra.mxu0 %v2577_v24  ;;  %3846 = vmatprep.subr.mxu1 %v4765_v42  ;;  %v2844_v24 = vld [vmem:[%s4761_s2 + $0x295] sm:$0xff] }
 0x2a3   : > { %3867 = vmatprep.subr.mxu0 %v4765_v42  ;;  %3847 = vmatpush3.msra.mxu1 %v2495_v48  ;;  %v2843_v48 = vld [vmem:[%s4761_s2 + $0x28d] sm:$0xff] }
 0x2a4   : > { %3868 = vmatpush3.msra.mxu0 %v2576_v0  ;;  %3848 = vmatprep.subr.mxu1 %v4765_v42 }
 0x2a5   : > { %3869 = vmatprep.subr.mxu0 %v4765_v42  ;;  %3849 = vmatpush3.msra.mxu1 %v2494_v2 }
 0x2a6   : > { %3870 = vmatpush3.msra.mxu0 %v2575_v27  ;;  %3850 = vmatprep.subr.mxu1 %v4765_v42 }
 0x2a7   : > { %3871 = vmatprep.subr.mxu0 %v4765_v42  ;;  %3851 = vmatpush3.msra.mxu1 %v2493_v11 }
 0x2a8   : > { %3872 = vmatpush3.msra.mxu0 %v2574_v51  ;;  %3873 = vmatprep.mubr.msk.f32.mxu0 %vm3991_vm2, %v4765_v42  ;;  %v2837_v51 = vld [vmem:[%s4761_s2 + $0x28b] sm:$0x1] }
 0x2a9   : > { %3852 = vmatprep.subr.mxu1 %v4765_v42  ;;  %3874 = vmatmul.mubr.msk.f32.vlgmr.msra.gmra.mxu0 %vm2183_vm3, %v2582_v54 }
 0x2aa   : > { %3895 = vmatprep.subr.mxu0 %v4765_v42  ;;  %3853 = vmatpush3.msra.mxu1 %v2492_v10  ;;  %v2838_v10 = vld [vmem:[%s4761_s2 + $0x28c] sm:$0x1] }
 0x2ab   : > { %3854 = vmatprep.mubr.msk.f32.mxu1 %vm3991_vm2, %v4765_v42  ;;  %3896 = vmatpush3.msra.mxu0 %v2745_v50 }
 0x2ac   : > { %3855 = vmatmul.mubr.msk.f32.vlgmr.msra.gmra.mxu1 %vm2183_vm3, %v2500_v6  ;;  %3876 = vmatprep.subr.mxu1 %v4765_v42 }
 0x2ad   : > { %3897 = vmatprep.subr.mxu0 %v4765_v42  ;;  %3877 = vmatpush3.msra.mxu1 %v2663_v61  ;;  %v3010_v61 = vld [vmem:[%s4761_s2 + $0x2ea] sm:$0xff] }
 0x2ae   : > { %3898 = vmatpush3.msra.mxu0 %v2744_v21  ;;  %3878 = vmatprep.subr.mxu1 %v4765_v42 }
 0x2af   : > { %3899 = vmatprep.subr.mxu0 %v4765_v42  ;;  %3879 = vmatpush3.msra.mxu1 %v2662_v63  ;;  %v3009_v63 = vld [vmem:[%s4761_s2 + $0x2e2] sm:$0xff] }
 0x2b0   : > { %3900 = vmatpush3.msra.mxu0 %v2743_v26  ;;  %3880 = vmatprep.subr.mxu1 %v4765_v42  ;;  %v3008_v26 = vld [vmem:[%s4761_s2 + $0x2da] sm:$0xff] }
 0x2b1   : > { %3901 = vmatprep.subr.mxu0 %v4765_v42  ;;  %3881 = vmatpush3.msra.mxu1 %v2661_v31  ;;  %v3007_v31 = vld [vmem:[%s4761_s2 + $0x2d2] sm:$0xff] }
 0x2b2   : > { %3902 = vmatpush3.msra.mxu0 %v2742_v49  ;;  %3882 = vmatprep.subr.mxu1 %v4765_v42 }
 0x2b3   : > { %3903 = vmatprep.subr.mxu0 %v4765_v42  ;;  %3883 = vmatpush3.msra.mxu1 %v2660_v15 }
 0x2b4   : > { %3904 = vmatpush3.msra.mxu0 %v2741_v8  ;;  %3884 = vmatprep.subr.mxu1 %v4765_v42  ;;  %v3006_v8 = vld [vmem:[%s4761_s2 + $0x2ca] sm:$0xff] }
 0x2b5   : > { %3905 = vmatprep.subr.mxu0 %v4765_v42  ;;  %3885 = vmatpush3.msra.mxu1 %v2659_v17  ;;  %v3005_v17 = vld [vmem:[%s4761_s2 + $0x2c2] sm:$0xff] }
 0x2b6   : > { %3906 = vmatpush3.msra.mxu0 %v2740_v3  ;;  %3886 = vmatprep.subr.mxu1 %v4765_v42  ;;  %v3004_v3 = vld [vmem:[%s4761_s2 + $0x2ba] sm:$0xff] }
 0x2b7   : > { %3907 = vmatprep.subr.mxu0 %v4765_v42  ;;  %3887 = vmatpush3.msra.mxu1 %v2658_v44  ;;  %v3003_v44 = vld [vmem:[%s4761_s2 + $0x2b2] sm:$0xff] }
 0x2b8   : > { %3908 = vmatpush3.msra.mxu0 %v2739_v46  ;;  %3888 = vmatprep.subr.mxu1 %v4765_v42  ;;  %v3093_v46 = vld [vmem:[%s4761_s2 + $0x32b] sm:$0xff] }
 0x2b9   : > { %3909 = vmatprep.subr.mxu0 %v4765_v42  ;;  %3889 = vmatpush3.msra.mxu1 %v2657_v32  ;;  %v3092_v32 = vld [vmem:[%s4761_s2 + $0x323] sm:$0xff] }
 0x2ba   : > { %3910 = vmatpush3.msra.mxu0 %v2738_v25  ;;  %3911 = vmatprep.mubr.msk.f32.mxu0 %vm3991_vm2, %v4765_v42  ;;  %v3091_v25 = vld [vmem:[%s4761_s2 + $0x31b] sm:$0xff] }
 0x2bb   : > { %3890 = vmatprep.subr.mxu1 %v4765_v42  ;;  %3912 = vmatmul.mubr.msk.f32.vlgmr.msra.gmra.mxu0 %vm2183_vm3, %v2746_v55  ;;  %v3090_v55 = vld [vmem:[%s4761_s2 + $0x313] sm:$0xff] }
 0x2bc   : > { %3891 = vmatpush3.msra.mxu1 %v2656_v35  ;;  %3892 = vmatprep.mubr.msk.f32.mxu1 %vm3991_vm2, %v4765_v42  ;;  %v3089_v35 = vld [vmem:[%s4761_s2 + $0x30b] sm:$0xff] }
 0x2bd   : > { %3893 = vmatmul.mubr.msk.f32.vlgmr.msra.gmra.mxu1 %vm2183_vm3, %v2664_v58  ;;  %3914 = vmatprep.subr.mxu1 %v4765_v42  ;;  %v2848_v58 = vld [vmem:[%s4761_s2 + $0x2b1] sm:$0x1] }
 0x2be   : > { %3916 = vmatprep.mubr.msk.f32.mxu1 %vm3991_vm2, %v4765_v42  ;;  %3949 = vmatprep.subr.mxu0 %v4765_v42 }
 0x2bf   : > { %3965 = vmatprep.mubr.msk.f32.mxu0 %vm3991_vm2, %v4765_v42  ;;  %3915 = vmatpush3.msk.msra.mxu1 %vm2853_vm5, %v2847_v60 }
 0x2c0   : > { %3919 = vmatprep.subr.mxu1 %v4765_v42  ;;  %3950 = vmatpush3.msra.mxu0 %v3093_v46 }
 0x2c1   : > { %3917 = vmatmul.mubr.msk.f32.vlgmr.msra.gmra.mxu1 %vm2849_vm6, %v2842_v43  ;;  %3951 = vmatprep.subr.mxu0 %v4765_v42 }
 0x2c2   : > { %3920 = vmatpush3.msra.mxu1 %v2846_v22  ;;  %3927 = vmatprep.mubr.msk.f32.mxu1 %vm3991_vm2, %v4765_v42 }
 0x2c3   : > { %3921 = vmatprep.subr.mxu1 %v4765_v42  ;;  %3952 = vmatpush3.msra.mxu0 %v3092_v32 }
 0x2c4   : > { %3922 = vmatpush3.msra.mxu1 %v2845_v47  ;;  %3953 = vmatprep.subr.mxu0 %v4765_v42 }
 0x2c5   : > { %3923 = vmatprep.subr.mxu1 %v4765_v42  ;;  %3954 = vmatpush3.msra.mxu0 %v3091_v25 }
 0x2c6   : > { %3924 = vmatpush3.msra.mxu1 %v2844_v24  ;;  %3955 = vmatprep.subr.mxu0 %v4765_v42 }
 0x2c7   : > { %3925 = vmatprep.subr.mxu1 %v4765_v42  ;;  %3956 = vmatpush3.msra.mxu0 %v3090_v55 }
 0x2c8   : > { %3926 = vmatpush3.msra.mxu1 %v2843_v48  ;;  %3957 = vmatprep.subr.mxu0 %v4765_v42 }
 0x2c9   : > { %3930 = vmatprep.subr.mxu1 %v4765_v42  ;;  %3958 = vmatpush3.msra.mxu0 %v3089_v35 }
 0x2ca   : > { %3959 = vmatprep.subr.mxu0 %v4765_v42 }
 0x347   : > { %v2324_v12 = vpop.f32.mrf.mxu0 }
 0x349   : > { %v2252_v14 = vpop.f32.mrf.mxu1  ;;  %v3799_v52 = vpop.f32.mrf.mxu0 }
 0x34a   : > { %v2325_v56 = vadd.f32 %v2324_v12, %v2252_v14 }
 0x34b   : > { %v3780_v20 = vpop.f32.mrf.mxu1 }
 0x357   : > { %v2487_v9 = vpop.f32.mrf.mxu0 }
 0x359   : > { %v3837_v1 = vpop.f32.mrf.mxu0 }
 0x35a   : > { %v2405_v29 = vpop.f32.mrf.mxu1  ;;  %v3088_v1 = vld [vmem:[%s4761_s2 + $0x303] sm:$0xff] }
 0x35b   : > { %v2409_v19 = vadd.f32 %v2405_v29, %v2325_v56  ;;  %3960 = vmatpush3.msra.mxu0 %v3088_v1  ;;  %v3087_v29 = vld [vmem:[%s4761_s2 + $0x2fb] sm:$0xff] }
 0x35c   : > { %v3818_v28 = vpop.f32.mrf.mxu1  ;;  %3961 = vmatprep.subr.mxu0 %v4765_v42 }
 0x35d   : > { %v2491_v7 = vadd.f32 %v2487_v9, %v2409_v19  ;;  %3962 = vmatpush3.msra.mxu0 %v3087_v29  ;;  %v3086_v28 = vld [vmem:[%s4761_s2 + $0x2f3] sm:$0xff] }
 0x35e   : > { %3963 = vmatprep.subr.mxu0 %v4765_v42  ;;  %v3094_v19 = vld [vmem:[%s4761_s2 + $0x333] sm:$0x1] }
 0x35f   : > { %3964 = vmatpush3.msra.mxu0 %v3086_v28 }
 0x369   : > { %v2651_v30 = vpop.f32.mrf.mxu0 }
 0x36b   : > { %v3875_v33 = vpop.f32.mrf.mxu0 }
 0x36c   : > { %v2569_v34 = vpop.f32.mrf.mxu1 }
 0x36d   : > { %v2573_v45 = vadd.f32 %v2569_v34, %v2491_v7 }
 0x36e   : > { %v3856_v53 = vpop.f32.mrf.mxu1 }
 0x36f   : > { %v2655_v18 = vadd.f32 %v2651_v30, %v2573_v45  ;;  %v3011_v30 = vld [vmem:[%s4761_s2 + $0x2f2] sm:$0x1] }
 0x37b   : > { %v2815_v4 = vpop.f32.mrf.mxu0 }
 0x37d   : > { %v2733_v37 = vpop.f32.mrf.mxu1  ;;  %v3913_v59 = vpop.f32.mrf.mxu0 }
 0x37e   : > { %v2737_v62 = vadd.f32 %v2733_v37, %v2655_v18 }
 0x37f   : > { %v3894_v16 = vpop.f32.mrf.mxu1 }
 0x380   : > { %v2819_v23 = vadd.f32 %v2815_v4, %v2737_v62 }
 0x381   : > { %v2923_v49 = vpop.f32.mrf.mxu1 }
 0x382   : > { %v2821_v38 = vadd.f32 %v2820_v5, %v2819_v23 }
 0x383   : > { %v3918_v15 = vpop.f32.mrf.mxu1 }
 0x384   : > { %v2823_v39 = vsel %vm2822_vm4, %v2821_v38, 0.0 }
 0x385   : > { %2824 = vadd.xlane.f32.xlu1 %v2823_v39 }
 0x40e   : > { %v2825_v40 = vpop.xlane.xlu1 %2824 }
 0x40f   : > { %v2827_v13 = vmul.f32 0.03125, %v2825_v40 }
 0x411   : > { %v2828_v36 = vsub.f32 %v2821_v38, %v2827_v13 }
 0x413   : > { %v2829_v41 = vmul.f32 %v2828_v36, %v2828_v36 }
 0x415   : > { %v2830_v57 = vsel %vm2822_vm4, %v2829_v41, 0.0 }
 0x416   : > { %2831 = vadd.xlane.f32.xlu1 %v2830_v57 }
 0x49f   : > { %v2832_v0 = vpop.xlane.xlu1 %2831 }
 0x4a0   : > { %v2833_v2 = vmul.f32 0.03125, %v2832_v0 }
 0x4a2   : > { %v2834_v27 = vadd.f32 1e-05, %v2833_v2 }
 0x4a4   : > { %3978 = vrsqrt.f32 %v2834_v27 }
 0x4b1   : > { %v3979_v11 = vpop.eup %3978 }
 0x4b2   : > { %v2836_v54 = vmul.f32 %v3979_v11, %v2828_v36 }
 0x4b4   : > { %v2839_v50 = vmul.f32 %v2837_v51, %v2836_v54 }
 0x4b6   : > { %v2840_v6 = vadd.f32 %v2839_v50, %v2838_v10 }
 0x4b8   : > { %3980 = vtanh.f32 %v2840_v6 }
 0x4c5   : > { %v3981_v21 = vpop.eup %3980 }
 0x4c6   : > { %3928 = vmatmul.mubr.msk.f32.vlgmr.msra.gmra.mxu1 %vm2927_vm7, %v3981_v21 }
 0x4c7   : > { %3931 = vmatpush3.msra.mxu1 %v3010_v61  ;;  %3946 = vmatprep.mubr.msk.f32.mxu1 %vm3991_vm2, %v4765_v42 }
 0x4c8   : > { %3932 = vmatprep.subr.mxu1 %v4765_v42 }
 0x4c9   : > { %3933 = vmatpush3.msra.mxu1 %v3009_v63 }
 0x4ca   : > { %3934 = vmatprep.subr.mxu1 %v4765_v42 }
 0x4cb   : > { %3935 = vmatpush3.msra.mxu1 %v3008_v26 }
 0x4cc   : > { %3936 = vmatprep.subr.mxu1 %v4765_v42 }
 0x4cd   : > { %3937 = vmatpush3.msra.mxu1 %v3007_v31 }
 0x4ce   : > { %3938 = vmatprep.subr.mxu1 %v4765_v42 }
 0x4cf   : > { %3939 = vmatpush3.msra.mxu1 %v3006_v8 }
 0x4d0   : > { %3940 = vmatprep.subr.mxu1 %v4765_v42 }
 0x4d1   : > { %3941 = vmatpush3.msra.mxu1 %v3005_v17 }
 0x4d2   : > { %3942 = vmatprep.subr.mxu1 %v4765_v42 }
 0x4d3   : > { %3943 = vmatpush3.msra.mxu1 %v3004_v3 }
 0x4d4   : > { %3944 = vmatprep.subr.mxu1 %v4765_v42 }
 0x4d5   : > { %3945 = vmatpush3.msra.mxu1 %v3003_v44 }
 0x586   : > { %v2997_v12 = vpop.f32.mrf.mxu1 }
 0x587   : > { %v2998_v14 = vadd.f32 %v2997_v12, %v2923_v49 }
 0x588   : > { %v3929_v52 = vpop.f32.mrf.mxu1 }
 0x589   : > { %v3001_v20 = vadd.f32 %v2998_v14, %v2848_v58 }
 0x58b   : > { %v3002_v9 = vmax.f32 %v3001_v20, 0.0 }
 0x58d   : > { %3947 = vmatmul.mubr.msk.f32.vlgmr.msra.gmra.mxu1 %vm2183_vm3, %v3002_v9 }
 0x64d   : > { %v3081_v33 = vpop.f32.mrf.mxu1 }
 0x64e   : > { %v3082_v34 = vadd.f32 %v3081_v33, %v3011_v30 }
 0x64f   : > { %v3948_v53 = vpop.f32.mrf.mxu1 }
 0x650   : > { %v3085_v56 = vmax.f32 %v3082_v34, 0.0 }
 0x652   : > { %3966 = vmatmul.mubr.msk.f32.vlgmr.msra.gmra.mxu0 %vm2183_vm3, %v3085_v56 }
 0x712   : > { %v3164_v42 = vpop.f32.mrf.mxu0 }
 0x713   : > { %v3165_v7 = vadd.f32 %v3164_v42, %v3094_v19 }
 0x714   : > { %v3967_v45 = vpop.f32.mrf.mxu0 }
 0x715   : > { %3168 = vst [vmem:[%s180_s18] sm:$0x1] %v3165_v7 }
 0x716 PF: > { %s13_s12 = sadd.s32 1, %s3988_s12  }
 0x717   : > { %p10_p4 = scmp.ge.s32.totalorder %s13_s12, 4  }
 0x719   :  { %12 = sbr.rel (!%p10_p4) target bundleno = 1 (0x1), region = 65 }

</bundles_post_ra>
